<compile_context>
chip_gen: v5e
topology: v5e:2x2
jax: 0.10.0
libtpu: 0.0.40
codegen_flags: <defaults>
</compile_context>

<pallas_src>
import math

import jax
import jax.numpy as jnp
from jax.experimental import pallas as pl
from jax.experimental.pallas import tpu as pltpu

# ----------------------------- configuration -------------------------------
B = 2                 # batch size
OBS_LEN = 8           # observation_len (sequence length T)
PRED_LEN = 4          # prediction_len
D_MODEL = 32          # d_model
NUM_HEADS = 2
NUM_LAYERS = 2
DIM_FF = 2 * D_MODEL  # dim_feedforward = 2 * d_model
AGENT_N = 5           # agent_type n_labels
AGENT_EMB = 6         # agent_type embedding_dim (condition: 'embedding')
ACT_N = 4             # action n_labels == act_classes
ACT_EMB = 8           # action embedding_dim (condition: 'embedding')
IN_FEATS = 2          # one feature stream ('scl_obs' -> 2 dims)
DIN = IN_FEATS + ACT_EMB                 # emb_net input dim = 10
INTER = (D_MODEL + AGENT_EMB) // 2       # intermediate_size = 19
HEAD_DIM = D_MODEL // NUM_HEADS          # 16
LN_EPS = 1e-5

BT = B * OBS_LEN          # 16 flattened (batch*time) rows
INTER_PAD = 24            # intermediate_size padded to a multiple of 8
OUT_DIM = ACT_N * PRED_LEN                # 16

# misc slab (f32, MISC_ROWS x 128): VPU-side constants & small decoder weights
_R_WSCL = 0      # 2 rows   lanes [0,32)  emb W rows for the 2 scl_obs features
_R_ACTF = 8      # 4 rows   lanes [0,32)  act_table @ W_emb[2:]  (fused act emb)
_R_PEB = 16      # 16 rows  lanes [0,32)  tiled positional encoding + emb bias
_R_MASK = 32     # 16 rows  lanes [0,16)  block-diagonal additive attention mask
_R_POOL = 48     # 2 rows   lanes [0,16)  temporal mean-pool matrix
_R_WD1H = 56     # 32 rows  lanes [0,24)  decoder W1 (hn part)
_R_AGF = 88      # 5 rows   lanes [0,24)  agent_table @ Wd1[32:] (fused agent emb)
_R_WD2 = 96      # 24 rows  lanes [0,16)  decoder W2
_R_BD1 = 120     # 2 rows   lanes [0,24)  decoder b1 (replicated over batch)
_R_BD2 = 122     # 2 rows   lanes [0,16)  decoder b2 (replicated over batch)
MISC_ROWS = 128

# per-layer MXU weight slab (bf16, NUM_LAYERS x 160 x 96)
_W_QKV = 0                    # rows [0,32)    lanes [0,96)
_W_O = 32                     # rows [32,64)   lanes [0,32)
_W_FF1 = 64                   # rows [64,96)   lanes [0,64)
_W_FF2 = 96                   # rows [96,160)  lanes [0,32)
WL_ROWS = 160

# per-layer bias / LayerNorm slab (f32, NUM_LAYERS x (8*BT) x 96);
# every row vector is pre-replicated over the BT=16 sublanes.
_B_QKV, _B_FF1, _B_O, _B_FF2, _B_G1, _B_BE1, _B_G2, _B_BE2 = range(8)
BLN_ROWS = 8 * BT


# ------------------------------ Pallas kernel -------------------------------
def _layer_norm(v, g, b):
    # var = E[x^2] - E[x]^2 : two independent reductions instead of a chain
    mu = jnp.mean(v, axis=-1, keepdims=True)
    ms = jnp.mean(v * v, axis=-1, keepdims=True)
    inv = jax.lax.rsqrt(ms - mu * mu + LN_EPS)
    return (v - mu) * inv * g + b


def transformer_kernel(scl_ref, act_ref, agt_ref, misc_ref, wl_ref, bln_ref,
                       out_ref):
    # ---- fused emb_net + action-embedding lookup + positional encoding ----
    # scl_obs contribution: two rank-1 broadcast products (VPU, no tiny-K matmul)
    w0 = misc_ref[_R_WSCL:_R_WSCL + 1, 0:D_MODEL]          # (1, D)
    w1 = misc_ref[_R_WSCL + 1:_R_WSCL + 2, 0:D_MODEL]
    parts = []
    for b in range(B):
        sb = scl_ref[b]                                    # (OBS_LEN, 2)
        parts.append(sb[:, 0:1] * w0 + sb[:, 1:2] * w1)    # (OBS_LEN, D)
    h = jnp.concatenate(parts, axis=0)                     # (BT, D)

    # action-label lookup: labels live in SMEM; build a (BT,1) label column and
    # select among the 4 pre-fused embedding rows with VPU masks (no gather).
    row16 = jax.lax.broadcasted_iota(jnp.int32, (BT, 1), 0)
    lbl = jnp.zeros((BT, 1), jnp.int32)
    for b in range(B):
        for t in range(OBS_LEN):
            lbl = jnp.where(row16 == b * OBS_LEN + t, act_ref[b, t], lbl)
    for c in range(ACT_N):
        h = h + (lbl == c).astype(jnp.float32) * \
            misc_ref[_R_ACTF + c:_R_ACTF + c + 1, 0:D_MODEL]

    h = h + misc_ref[_R_PEB:_R_PEB + BT, 0:D_MODEL]        # tiled PE + emb bias

    neg_mask = misc_ref[_R_MASK:_R_MASK + BT, 0:BT]        # block-diag 0 / -1e30
    scale = 1.0 / math.sqrt(HEAD_DIM)
    dn_qkT = (((1,), (1,)), ((), ()))                      # q @ k^T (last dims)

    for l in range(NUM_LAYERS):
        wqkv = wl_ref[l, _W_QKV:_W_QKV + D_MODEL, 0:3 * D_MODEL]     # bf16 (D,3D)
        w1f = wl_ref[l, _W_FF1:_W_FF1 + D_MODEL, 0:DIM_FF]           # bf16 (D,FF)
        w2f = wl_ref[l, _W_FF2:_W_FF2 + DIM_FF, 0:D_MODEL]           # bf16 (FF,D)
        bqkv = bln_ref[l, _B_QKV * BT:(_B_QKV + 1) * BT, 0:3 * D_MODEL]
        b1 = bln_ref[l, _B_FF1 * BT:(_B_FF1 + 1) * BT, 0:DIM_FF]
        bo = bln_ref[l, _B_O * BT:(_B_O + 1) * BT, 0:D_MODEL]
        b2 = bln_ref[l, _B_FF2 * BT:(_B_FF2 + 1) * BT, 0:D_MODEL]
        g1 = bln_ref[l, _B_G1 * BT:(_B_G1 + 1) * BT, 0:D_MODEL]
        be1 = bln_ref[l, _B_BE1 * BT:(_B_BE1 + 1) * BT, 0:D_MODEL]
        g2 = bln_ref[l, _B_G2 * BT:(_B_G2 + 1) * BT, 0:D_MODEL]
        be2 = bln_ref[l, _B_BE2 * BT:(_B_BE2 + 1) * BT, 0:D_MODEL]

        # ---- multi-head self-attention (post-LN encoder block) ----
        qkv = jnp.dot(h.astype(jnp.bfloat16), wqkv,
                      preferred_element_type=jnp.float32) + bqkv     # (BT, 3D)

        attn = bo
        for hh in range(NUM_HEADS):
            lo = hh * HEAD_DIM
            qh = qkv[:, lo:lo + HEAD_DIM]
            kh = qkv[:, D_MODEL + lo:D_MODEL + lo + HEAD_DIM]
            vh = qkv[:, 2 * D_MODEL + lo:2 * D_MODEL + lo + HEAD_DIM]
            s = jax.lax.dot_general(qh, kh, dn_qkT,
                                    preferred_element_type=jnp.float32) * scale
            # No max-subtraction: |scores| stay far below f32 exp limits for this
            # tiny model (scale=0.25); masked entries (-1e30) underflow to 0.
            p = jnp.exp(s + neg_mask)
            inv = pl.reciprocal(jnp.sum(p, axis=-1, keepdims=True), approx=True)
            o_h = jnp.dot(p, vh, preferred_element_type=jnp.float32)  # unnormalized
            wo_h = wl_ref[l, _W_O + lo:_W_O + lo + HEAD_DIM, 0:D_MODEL]
            # Per-head partial output projection (no lane-offset concat); softmax
            # normalization deferred past both matmuls so it overlaps with them.
            attn = attn + jnp.dot(o_h.astype(jnp.bfloat16), wo_h,
                                  preferred_element_type=jnp.float32) * inv

        h = _layer_norm(h + attn, g1, be1)

        # ---- feed-forward: Linear -> (Dropout) -> ReLU -> Linear ----
        ff = jnp.dot(h.astype(jnp.bfloat16), w1f,
                     preferred_element_type=jnp.float32) + b1
        ff = jnp.maximum(ff, 0.0)
        ff = jnp.dot(ff.astype(jnp.bfloat16), w2f,
                     preferred_element_type=jnp.float32) + b2

        h = _layer_norm(h + ff, g2, be2)

    # ---- temporal mean pooling via precomputed (B, BT) pooling matrix ----
    pool = misc_ref[_R_POOL:_R_POOL + B, 0:BT]
    hn = jnp.dot(pool, h, preferred_element_type=jnp.float32)         # (B, D)

    # ---- decoder_actions with fused agent-type embedding lookup ----
    rowb = jax.lax.broadcasted_iota(jnp.int32, (B, 1), 0)
    albl = jnp.zeros((B, 1), jnp.int32)
    for b in range(B):
        albl = jnp.where(rowb == b, agt_ref[b, 0], albl)
    ag = jnp.zeros((B, INTER_PAD), jnp.float32)
    for c in range(AGENT_N):
        ag = ag + (albl == c).astype(jnp.float32) * \
            misc_ref[_R_AGF + c:_R_AGF + c + 1, 0:INTER_PAD]

    wd1_h = misc_ref[_R_WD1H:_R_WD1H + D_MODEL, 0:INTER_PAD]
    wd2 = misc_ref[_R_WD2:_R_WD2 + INTER_PAD, 0:OUT_DIM]
    bd1 = misc_ref[_R_BD1:_R_BD1 + B, 0:INTER_PAD]
    bd2 = misc_ref[_R_BD2:_R_BD2 + B, 0:OUT_DIM]

    z = jnp.dot(hn, wd1_h, preferred_element_type=jnp.float32) + ag + bd1
    z = jnp.maximum(z, 0.0)                                 # Dropout -> identity
    out_ref[...] = jnp.dot(z, wd2, preferred_element_type=jnp.float32) + bd2


# ------------------------------ host wrapper --------------------------------
@jax.jit
def transformer_forward(scl_obs, action_labels, agent_type, params):
    misc, wl, bln = params
    out = pl.pallas_call(
        transformer_kernel,
        out_shape=jax.ShapeDtypeStruct((B, OUT_DIM), jnp.float32),
        in_specs=[
            pl.BlockSpec(memory_space=pltpu.MemorySpace.VMEM),   # scl_obs
            pl.BlockSpec(memory_space=pltpu.MemorySpace.SMEM),   # action labels
            pl.BlockSpec(memory_space=pltpu.MemorySpace.SMEM),   # agent labels
            pl.BlockSpec(memory_space=pltpu.MemorySpace.VMEM),   # misc slab
            pl.BlockSpec(memory_space=pltpu.MemorySpace.VMEM),   # per-layer weights
            pl.BlockSpec(memory_space=pltpu.MemorySpace.VMEM),   # biases / LN
        ],
        out_specs=pl.BlockSpec(memory_space=pltpu.MemorySpace.VMEM),
    )(scl_obs, action_labels, agent_type, misc, wl, bln)
    # act_pred.view(bs, -1, act_classes)
    return out.reshape(B, PRED_LEN, ACT_N)


# --------------------------- deterministic params ---------------------------
def _xavier(key, shape):
    fan_in, fan_out = shape[-2], shape[-1]
    limit = math.sqrt(6.0 / (fan_in + fan_out))
    return jax.random.uniform(key, shape, jnp.float32, -limit, limit)


def sinusoidal_pe(seq_len, d_model):
    pos = jnp.arange(seq_len, dtype=jnp.float32)[:, None]
    div = jnp.exp(jnp.arange(0, d_model, 2, dtype=jnp.float32)
                  * (-math.log(10000.0) / d_model))
    pe = jnp.zeros((seq_len, d_model), jnp.float32)
    pe = pe.at[:, 0::2].set(jnp.sin(pos * div))
    pe = pe.at[:, 1::2].set(jnp.cos(pos * div))
    return pe


def build_params(key):
    ks = jax.random.split(key, 9)
    # logical parameters (weights stored pre-transposed: (in, out))
    w_emb = _xavier(ks[0], (DIN, D_MODEL))
    b_emb = jnp.zeros((D_MODEL,), jnp.float32)
    # QKV packing order matches nn.MultiheadAttention in_proj ([q; k; v]).
    wqkv = _xavier(ks[1], (NUM_LAYERS, D_MODEL, 3 * D_MODEL))
    bqkv = jnp.zeros((NUM_LAYERS, 3 * D_MODEL), jnp.float32)
    wo = _xavier(ks[2], (NUM_LAYERS, D_MODEL, D_MODEL))
    bo = jnp.zeros((NUM_LAYERS, D_MODEL), jnp.float32)
    g1 = jnp.ones((NUM_LAYERS, D_MODEL), jnp.float32)
    be1 = jnp.zeros((NUM_LAYERS, D_MODEL), jnp.float32)
    w1 = _xavier(ks[3], (NUM_LAYERS, D_MODEL, DIM_FF))
    b1 = jnp.zeros((NUM_LAYERS, DIM_FF), jnp.float32)
    w2 = _xavier(ks[4], (NUM_LAYERS, DIM_FF, D_MODEL))
    b2 = jnp.zeros((NUM_LAYERS, D_MODEL), jnp.float32)
    g2 = jnp.ones((NUM_LAYERS, D_MODEL), jnp.float32)
    be2 = jnp.zeros((NUM_LAYERS, D_MODEL), jnp.float32)
    # decoder: cat_class_emb(hn, agent) -> [hn, agent] concatenation order
    wd1 = _xavier(ks[5], (D_MODEL + AGENT_EMB, INTER))
    bd1 = jnp.zeros((INTER,), jnp.float32)
    wd2 = _xavier(ks[6], (INTER, OUT_DIM))
    bd2 = jnp.zeros((OUT_DIM,), jnp.float32)
    agent_table = _xavier(ks[7], (AGENT_N, AGENT_EMB))   # LatentEmbedding (agent)
    act_table = _xavier(ks[8], (ACT_N, ACT_EMB))         # LatentEmbedding (action)

    # exact constant folds: onehot @ table @ W  ==  onehot @ (table @ W)
    act_fused = act_table @ w_emb[IN_FEATS:, :]          # (ACT_N, D_MODEL)
    agent_fused = agent_table @ wd1[D_MODEL:, :]         # (AGENT_N, INTER)
    pe_b = jnp.tile(sinusoidal_pe(OBS_LEN, D_MODEL), (B, 1)) + b_emb[None, :]

    r = jnp.arange(BT)[:, None] // OBS_LEN
    c = jnp.arange(BT)[None, :] // OBS_LEN
    neg_mask = jnp.where(r == c, 0.0, -1e30).astype(jnp.float32)
    pool = jnp.where(jnp.arange(B)[:, None] == c[0:1, :], 1.0 / OBS_LEN,
                     0.0).astype(jnp.float32)                       # (B, BT)

    # ---- pack into 3 slabs (zero padding is semantically inert) ----
    misc = jnp.zeros((MISC_ROWS, 128), jnp.float32)
    misc = misc.at[_R_WSCL:_R_WSCL + IN_FEATS, 0:D_MODEL].set(w_emb[:IN_FEATS])
    misc = misc.at[_R_ACTF:_R_ACTF + ACT_N, 0:D_MODEL].set(act_fused)
    misc = misc.at[_R_PEB:_R_PEB + BT, 0:D_MODEL].set(pe_b)
    misc = misc.at[_R_MASK:_R_MASK + BT, 0:BT].set(neg_mask)
    misc = misc.at[_R_POOL:_R_POOL + B, 0:BT].set(pool)
    misc = misc.at[_R_WD1H:_R_WD1H + D_MODEL, 0:INTER].set(wd1[:D_MODEL])
    misc = misc.at[_R_AGF:_R_AGF + AGENT_N, 0:INTER].set(agent_fused)
    misc = misc.at[_R_WD2:_R_WD2 + INTER, 0:OUT_DIM].set(wd2)
    misc = misc.at[_R_BD1:_R_BD1 + B, 0:INTER].set(jnp.tile(bd1[None, :], (B, 1)))
    misc = misc.at[_R_BD2:_R_BD2 + B, 0:OUT_DIM].set(jnp.tile(bd2[None, :], (B, 1)))

    wl = jnp.zeros((NUM_LAYERS, WL_ROWS, 3 * D_MODEL), jnp.bfloat16)
    wl = wl.at[:, _W_QKV:_W_QKV + D_MODEL, 0:3 * D_MODEL].set(
        wqkv.astype(jnp.bfloat16))
    wl = wl.at[:, _W_O:_W_O + D_MODEL, 0:D_MODEL].set(wo.astype(jnp.bfloat16))
    wl = wl.at[:, _W_FF1:_W_FF1 + D_MODEL, 0:DIM_FF].set(w1.astype(jnp.bfloat16))
    wl = wl.at[:, _W_FF2:_W_FF2 + DIM_FF, 0:D_MODEL].set(w2.astype(jnp.bfloat16))

    def rep(v):   # (L, N) -> (L, BT, N) replicated over the 16 sublanes
        return jnp.tile(v[:, None, :], (1, BT, 1))

    bln = jnp.zeros((NUM_LAYERS, BLN_ROWS, 3 * D_MODEL), jnp.float32)
    bln = bln.at[:, _B_QKV * BT:(_B_QKV + 1) * BT, 0:3 * D_MODEL].set(rep(bqkv))
    bln = bln.at[:, _B_FF1 * BT:(_B_FF1 + 1) * BT, 0:DIM_FF].set(rep(b1))
    bln = bln.at[:, _B_O * BT:(_B_O + 1) * BT, 0:D_MODEL].set(rep(bo))
    bln = bln.at[:, _B_FF2 * BT:(_B_FF2 + 1) * BT, 0:D_MODEL].set(rep(b2))
    bln = bln.at[:, _B_G1 * BT:(_B_G1 + 1) * BT, 0:D_MODEL].set(rep(g1))
    bln = bln.at[:, _B_BE1 * BT:(_B_BE1 + 1) * BT, 0:D_MODEL].set(rep(be1))
    bln = bln.at[:, _B_G2 * BT:(_B_G2 + 1) * BT, 0:D_MODEL].set(rep(g2))
    bln = bln.at[:, _B_BE2 * BT:(_B_BE2 + 1) * BT, 0:D_MODEL].set(rep(be2))

    return (misc, wl, bln)


# ----------------------------------- main ------------------------------------
if __name__ == "__main__":
    root = jax.random.PRNGKey(0)
    k_par, k_pos, k_act, k_agt = jax.random.split(root, 4)

    params = build_params(k_par)

    # Synthetic batch matching the module's input dict:
    #   x['features'][...]['scl_obs'] : (B, OBS_LEN, 2) float
    #   x['action']                   : (B, OBS_LEN)    int labels
    #   x['agent_type']               : (B, OBS_LEN)    int labels (uses ts 0)
    scl_obs = jax.random.normal(k_pos, (B, OBS_LEN, IN_FEATS), jnp.float32)
    action_labels = jax.random.randint(k_act, (B, OBS_LEN), 0, ACT_N)
    agent_type = jax.random.randint(k_agt, (B, OBS_LEN), 0, AGENT_N)

    act_pred = transformer_forward(scl_obs, action_labels, agent_type, params)
    act_pred = jax.block_until_ready(act_pred)

    assert act_pred.shape == (B, PRED_LEN, ACT_N), act_pred.shape
    assert bool(jnp.all(jnp.isfinite(act_pred)))
    # TODO(synk): dropout layers are identity (eval mode) and the external attention
    # mask is None; training-mode dropout / user-supplied masks are not implemented.
    print("KERNEL_OK")
</pallas_src>

<mosaic_0001>
module attributes {stable_mosaic.version = 11 : i64} {
  func.func @transformer_kernel(%arg0: memref<2x8x2xf32, #tpu.memory_space<vmem>>, %arg1: memref<2x8xi32, #tpu.memory_space<smem>>, %arg2: memref<2x8xi32, #tpu.memory_space<smem>>, %arg3: memref<128x128xf32, #tpu.memory_space<vmem>>, %arg4: memref<2x160x96xbf16, #tpu.memory_space<vmem>>, %arg5: memref<2x128x96xf32, #tpu.memory_space<vmem>>, %arg6: memref<2x16xf32, #tpu.memory_space<vmem>>) attributes {dimension_semantics = [], scalar_prefetch = 0 : i64, scratch_operands = 0 : i64, tpu.core_type = #tpu.core_type<tc>} {
    %c0 = arith.constant 0 : index
    %c0_0 = arith.constant 0 : index
    %0 = vector.load %arg3[%c0, %c0_0] : memref<128x128xf32, #tpu.memory_space<vmem>>, vector<1x32xf32>
    %c1 = arith.constant 1 : index
    %c0_1 = arith.constant 0 : index
    %1 = vector.load %arg3[%c1, %c0_1] : memref<128x128xf32, #tpu.memory_space<vmem>>, vector<1x32xf32>
    %c0_2 = arith.constant 0 : index
    %c0_3 = arith.constant 0 : index
    %c0_4 = arith.constant 0 : index
    %2 = vector.load %arg0[%c0_2, %c0_3, %c0_4] : memref<2x8x2xf32, #tpu.memory_space<vmem>>, vector<1x8x2xf32>
    %3 = vector.shape_cast %2 : vector<1x8x2xf32> to vector<8x2xf32>
    %4 = vector.extract_strided_slice %3 {offsets = [0, 0], sizes = [8, 1], strides = [1, 1]} : vector<8x2xf32> to vector<8x1xf32>
    %5 = vector.broadcast %4 : vector<8x1xf32> to vector<8x32xf32>
    %6 = vector.broadcast %0 : vector<1x32xf32> to vector<8x32xf32>
    %7 = arith.mulf %5, %6 : vector<8x32xf32>
    %8 = vector.extract_strided_slice %3 {offsets = [0, 1], sizes = [8, 1], strides = [1, 1]} : vector<8x2xf32> to vector<8x1xf32>
    %9 = vector.broadcast %8 : vector<8x1xf32> to vector<8x32xf32>
    %10 = vector.broadcast %1 : vector<1x32xf32> to vector<8x32xf32>
    %11 = arith.mulf %9, %10 : vector<8x32xf32>
    %12 = arith.addf %7, %11 : vector<8x32xf32>
    %c1_5 = arith.constant 1 : index
    %c0_6 = arith.constant 0 : index
    %c0_7 = arith.constant 0 : index
    %13 = vector.load %arg0[%c1_5, %c0_6, %c0_7] : memref<2x8x2xf32, #tpu.memory_space<vmem>>, vector<1x8x2xf32>
    %14 = vector.shape_cast %13 : vector<1x8x2xf32> to vector<8x2xf32>
    %15 = vector.extract_strided_slice %14 {offsets = [0, 0], sizes = [8, 1], strides = [1, 1]} : vector<8x2xf32> to vector<8x1xf32>
    %16 = vector.broadcast %15 : vector<8x1xf32> to vector<8x32xf32>
    %17 = vector.broadcast %0 : vector<1x32xf32> to vector<8x32xf32>
    %18 = arith.mulf %16, %17 : vector<8x32xf32>
    %19 = vector.extract_strided_slice %14 {offsets = [0, 1], sizes = [8, 1], strides = [1, 1]} : vector<8x2xf32> to vector<8x1xf32>
    %20 = vector.broadcast %19 : vector<8x1xf32> to vector<8x32xf32>
    %21 = vector.broadcast %1 : vector<1x32xf32> to vector<8x32xf32>
    %22 = arith.mulf %20, %21 : vector<8x32xf32>
    %23 = arith.addf %18, %22 : vector<8x32xf32>
    %24 = tpu.concatenate %12, %23 in 0 : vector<8x32xf32>, vector<8x32xf32> -> vector<16x32xf32>
    %25 = tpu.iota {dimensions = array<i32: 0>} : vector<16x1xi32>
    %c0_i32 = arith.constant 0 : i32
    %26 = vector.broadcast %c0_i32 : i32 to vector<16x1xi32>
    %c0_i32_8 = arith.constant 0 : i32
    %27 = vector.broadcast %c0_i32_8 : i32 to vector<16x1xi32>
    %28 = arith.cmpi eq, %25, %27 : vector<16x1xi32>
    %c0_9 = arith.constant 0 : index
    %c0_10 = arith.constant 0 : index
    %29 = memref.load %arg1[%c0_9, %c0_10] : memref<2x8xi32, #tpu.memory_space<smem>>
    %30 = vector.broadcast %29 : i32 to vector<16x1xi32>
    %31 = arith.select %28, %30, %26 : vector<16x1xi1>, vector<16x1xi32>
    %c1_i32 = arith.constant 1 : i32
    %32 = vector.broadcast %c1_i32 : i32 to vector<16x1xi32>
    %33 = arith.cmpi eq, %25, %32 : vector<16x1xi32>
    %c0_11 = arith.constant 0 : index
    %c1_12 = arith.constant 1 : index
    %34 = memref.load %arg1[%c0_11, %c1_12] : memref<2x8xi32, #tpu.memory_space<smem>>
    %35 = vector.broadcast %34 : i32 to vector<16x1xi32>
    %36 = arith.select %33, %35, %31 : vector<16x1xi1>, vector<16x1xi32>
    %c2_i32 = arith.constant 2 : i32
    %37 = vector.broadcast %c2_i32 : i32 to vector<16x1xi32>
    %38 = arith.cmpi eq, %25, %37 : vector<16x1xi32>
    %c0_13 = arith.constant 0 : index
    %c2 = arith.constant 2 : index
    %39 = memref.load %arg1[%c0_13, %c2] : memref<2x8xi32, #tpu.memory_space<smem>>
    %40 = vector.broadcast %39 : i32 to vector<16x1xi32>
    %41 = arith.select %38, %40, %36 : vector<16x1xi1>, vector<16x1xi32>
    %c3_i32 = arith.constant 3 : i32
    %42 = vector.broadcast %c3_i32 : i32 to vector<16x1xi32>
    %43 = arith.cmpi eq, %25, %42 : vector<16x1xi32>
    %c0_14 = arith.constant 0 : index
    %c3 = arith.constant 3 : index
    %44 = memref.load %arg1[%c0_14, %c3] : memref<2x8xi32, #tpu.memory_space<smem>>
    %45 = vector.broadcast %44 : i32 to vector<16x1xi32>
    %46 = arith.select %43, %45, %41 : vector<16x1xi1>, vector<16x1xi32>
    %c4_i32 = arith.constant 4 : i32
    %47 = vector.broadcast %c4_i32 : i32 to vector<16x1xi32>
    %48 = arith.cmpi eq, %25, %47 : vector<16x1xi32>
    %c0_15 = arith.constant 0 : index
    %c4 = arith.constant 4 : index
    %49 = memref.load %arg1[%c0_15, %c4] : memref<2x8xi32, #tpu.memory_space<smem>>
    %50 = vector.broadcast %49 : i32 to vector<16x1xi32>
    %51 = arith.select %48, %50, %46 : vector<16x1xi1>, vector<16x1xi32>
    %c5_i32 = arith.constant 5 : i32
    %52 = vector.broadcast %c5_i32 : i32 to vector<16x1xi32>
    %53 = arith.cmpi eq, %25, %52 : vector<16x1xi32>
    %c0_16 = arith.constant 0 : index
    %c5 = arith.constant 5 : index
    %54 = memref.load %arg1[%c0_16, %c5] : memref<2x8xi32, #tpu.memory_space<smem>>
    %55 = vector.broadcast %54 : i32 to vector<16x1xi32>
    %56 = arith.select %53, %55, %51 : vector<16x1xi1>, vector<16x1xi32>
    %c6_i32 = arith.constant 6 : i32
    %57 = vector.broadcast %c6_i32 : i32 to vector<16x1xi32>
    %58 = arith.cmpi eq, %25, %57 : vector<16x1xi32>
    %c0_17 = arith.constant 0 : index
    %c6 = arith.constant 6 : index
    %59 = memref.load %arg1[%c0_17, %c6] : memref<2x8xi32, #tpu.memory_space<smem>>
    %60 = vector.broadcast %59 : i32 to vector<16x1xi32>
    %61 = arith.select %58, %60, %56 : vector<16x1xi1>, vector<16x1xi32>
    %c7_i32 = arith.constant 7 : i32
    %62 = vector.broadcast %c7_i32 : i32 to vector<16x1xi32>
    %63 = arith.cmpi eq, %25, %62 : vector<16x1xi32>
    %c0_18 = arith.constant 0 : index
    %c7 = arith.constant 7 : index
    %64 = memref.load %arg1[%c0_18, %c7] : memref<2x8xi32, #tpu.memory_space<smem>>
    %65 = vector.broadcast %64 : i32 to vector<16x1xi32>
    %66 = arith.select %63, %65, %61 : vector<16x1xi1>, vector<16x1xi32>
    %c8_i32 = arith.constant 8 : i32
    %67 = vector.broadcast %c8_i32 : i32 to vector<16x1xi32>
    %68 = arith.cmpi eq, %25, %67 : vector<16x1xi32>
    %c1_19 = arith.constant 1 : index
    %c0_20 = arith.constant 0 : index
    %69 = memref.load %arg1[%c1_19, %c0_20] : memref<2x8xi32, #tpu.memory_space<smem>>
    %70 = vector.broadcast %69 : i32 to vector<16x1xi32>
    %71 = arith.select %68, %70, %66 : vector<16x1xi1>, vector<16x1xi32>
    %c9_i32 = arith.constant 9 : i32
    %72 = vector.broadcast %c9_i32 : i32 to vector<16x1xi32>
    %73 = arith.cmpi eq, %25, %72 : vector<16x1xi32>
    %c1_21 = arith.constant 1 : index
    %c1_22 = arith.constant 1 : index
    %74 = memref.load %arg1[%c1_21, %c1_22] : memref<2x8xi32, #tpu.memory_space<smem>>
    %75 = vector.broadcast %74 : i32 to vector<16x1xi32>
    %76 = arith.select %73, %75, %71 : vector<16x1xi1>, vector<16x1xi32>
    %c10_i32 = arith.constant 10 : i32
    %77 = vector.broadcast %c10_i32 : i32 to vector<16x1xi32>
    %78 = arith.cmpi eq, %25, %77 : vector<16x1xi32>
    %c1_23 = arith.constant 1 : index
    %c2_24 = arith.constant 2 : index
    %79 = memref.load %arg1[%c1_23, %c2_24] : memref<2x8xi32, #tpu.memory_space<smem>>
    %80 = vector.broadcast %79 : i32 to vector<16x1xi32>
    %81 = arith.select %78, %80, %76 : vector<16x1xi1>, vector<16x1xi32>
    %c11_i32 = arith.constant 11 : i32
    %82 = vector.broadcast %c11_i32 : i32 to vector<16x1xi32>
    %83 = arith.cmpi eq, %25, %82 : vector<16x1xi32>
    %c1_25 = arith.constant 1 : index
    %c3_26 = arith.constant 3 : index
    %84 = memref.load %arg1[%c1_25, %c3_26] : memref<2x8xi32, #tpu.memory_space<smem>>
    %85 = vector.broadcast %84 : i32 to vector<16x1xi32>
    %86 = arith.select %83, %85, %81 : vector<16x1xi1>, vector<16x1xi32>
    %c12_i32 = arith.constant 12 : i32
    %87 = vector.broadcast %c12_i32 : i32 to vector<16x1xi32>
    %88 = arith.cmpi eq, %25, %87 : vector<16x1xi32>
    %c1_27 = arith.constant 1 : index
    %c4_28 = arith.constant 4 : index
    %89 = memref.load %arg1[%c1_27, %c4_28] : memref<2x8xi32, #tpu.memory_space<smem>>
    %90 = vector.broadcast %89 : i32 to vector<16x1xi32>
    %91 = arith.select %88, %90, %86 : vector<16x1xi1>, vector<16x1xi32>
    %c13_i32 = arith.constant 13 : i32
    %92 = vector.broadcast %c13_i32 : i32 to vector<16x1xi32>
    %93 = arith.cmpi eq, %25, %92 : vector<16x1xi32>
    %c1_29 = arith.constant 1 : index
    %c5_30 = arith.constant 5 : index
    %94 = memref.load %arg1[%c1_29, %c5_30] : memref<2x8xi32, #tpu.memory_space<smem>>
    %95 = vector.broadcast %94 : i32 to vector<16x1xi32>
    %96 = arith.select %93, %95, %91 : vector<16x1xi1>, vector<16x1xi32>
    %c14_i32 = arith.constant 14 : i32
    %97 = vector.broadcast %c14_i32 : i32 to vector<16x1xi32>
    %98 = arith.cmpi eq, %25, %97 : vector<16x1xi32>
    %c1_31 = arith.constant 1 : index
    %c6_32 = arith.constant 6 : index
    %99 = memref.load %arg1[%c1_31, %c6_32] : memref<2x8xi32, #tpu.memory_space<smem>>
    %100 = vector.broadcast %99 : i32 to vector<16x1xi32>
    %101 = arith.select %98, %100, %96 : vector<16x1xi1>, vector<16x1xi32>
    %c15_i32 = arith.constant 15 : i32
    %102 = vector.broadcast %c15_i32 : i32 to vector<16x1xi32>
    %103 = arith.cmpi eq, %25, %102 : vector<16x1xi32>
    %c1_33 = arith.constant 1 : index
    %c7_34 = arith.constant 7 : index
    %104 = memref.load %arg1[%c1_33, %c7_34] : memref<2x8xi32, #tpu.memory_space<smem>>
    %105 = vector.broadcast %104 : i32 to vector<16x1xi32>
    %106 = arith.select %103, %105, %101 : vector<16x1xi1>, vector<16x1xi32>
    %c0_i32_35 = arith.constant 0 : i32
    %107 = vector.broadcast %c0_i32_35 : i32 to vector<16x1xi32>
    %108 = arith.cmpi eq, %106, %107 : vector<16x1xi32>
    %109 = arith.extui %108 : vector<16x1xi1> to vector<16x1xi32>
    %110 = arith.sitofp %109 : vector<16x1xi32> to vector<16x1xf32>
    %c8 = arith.constant 8 : index
    %c0_36 = arith.constant 0 : index
    %111 = vector.load %arg3[%c8, %c0_36] : memref<128x128xf32, #tpu.memory_space<vmem>>, vector<1x32xf32>
    %112 = vector.broadcast %110 : vector<16x1xf32> to vector<16x32xf32>
    %113 = vector.broadcast %111 : vector<1x32xf32> to vector<16x32xf32>
    %114 = arith.mulf %112, %113 : vector<16x32xf32>
    %115 = arith.addf %24, %114 : vector<16x32xf32>
    %c1_i32_37 = arith.constant 1 : i32
    %116 = vector.broadcast %c1_i32_37 : i32 to vector<16x1xi32>
    %117 = arith.cmpi eq, %106, %116 : vector<16x1xi32>
    %118 = arith.extui %117 : vector<16x1xi1> to vector<16x1xi32>
    %119 = arith.sitofp %118 : vector<16x1xi32> to vector<16x1xf32>
    %c9 = arith.constant 9 : index
    %c0_38 = arith.constant 0 : index
    %120 = vector.load %arg3[%c9, %c0_38] : memref<128x128xf32, #tpu.memory_space<vmem>>, vector<1x32xf32>
    %121 = vector.broadcast %119 : vector<16x1xf32> to vector<16x32xf32>
    %122 = vector.broadcast %120 : vector<1x32xf32> to vector<16x32xf32>
    %123 = arith.mulf %121, %122 : vector<16x32xf32>
    %124 = arith.addf %115, %123 : vector<16x32xf32>
    %c2_i32_39 = arith.constant 2 : i32
    %125 = vector.broadcast %c2_i32_39 : i32 to vector<16x1xi32>
    %126 = arith.cmpi eq, %106, %125 : vector<16x1xi32>
    %127 = arith.extui %126 : vector<16x1xi1> to vector<16x1xi32>
    %128 = arith.sitofp %127 : vector<16x1xi32> to vector<16x1xf32>
    %c10 = arith.constant 10 : index
    %c0_40 = arith.constant 0 : index
    %129 = vector.load %arg3[%c10, %c0_40] : memref<128x128xf32, #tpu.memory_space<vmem>>, vector<1x32xf32>
    %130 = vector.broadcast %128 : vector<16x1xf32> to vector<16x32xf32>
    %131 = vector.broadcast %129 : vector<1x32xf32> to vector<16x32xf32>
    %132 = arith.mulf %130, %131 : vector<16x32xf32>
    %133 = arith.addf %124, %132 : vector<16x32xf32>
    %c3_i32_41 = arith.constant 3 : i32
    %134 = vector.broadcast %c3_i32_41 : i32 to vector<16x1xi32>
    %135 = arith.cmpi eq, %106, %134 : vector<16x1xi32>
    %136 = arith.extui %135 : vector<16x1xi1> to vector<16x1xi32>
    %137 = arith.sitofp %136 : vector<16x1xi32> to vector<16x1xf32>
    %c11 = arith.constant 11 : index
    %c0_42 = arith.constant 0 : index
    %138 = vector.load %arg3[%c11, %c0_42] : memref<128x128xf32, #tpu.memory_space<vmem>>, vector<1x32xf32>
    %139 = vector.broadcast %137 : vector<16x1xf32> to vector<16x32xf32>
    %140 = vector.broadcast %138 : vector<1x32xf32> to vector<16x32xf32>
    %141 = arith.mulf %139, %140 : vector<16x32xf32>
    %142 = arith.addf %133, %141 : vector<16x32xf32>
    %c16 = arith.constant 16 : index
    %c0_43 = arith.constant 0 : index
    %143 = vector.load %arg3[%c16, %c0_43] : memref<128x128xf32, #tpu.memory_space<vmem>>, vector<16x32xf32>
    %144 = arith.addf %142, %143 : vector<16x32xf32>
    %c32 = arith.constant 32 : index
    %c0_44 = arith.constant 0 : index
    %145 = vector.load %arg3[%c32, %c0_44] : memref<128x128xf32, #tpu.memory_space<vmem>>, vector<16x16xf32>
    %c0_45 = arith.constant 0 : index
    %c0_46 = arith.constant 0 : index
    %c0_47 = arith.constant 0 : index
    %146 = vector.load %arg4[%c0_45, %c0_46, %c0_47] : memref<2x160x96xbf16, #tpu.memory_space<vmem>>, vector<1x32x96xbf16>
    %147 = vector.shape_cast %146 : vector<1x32x96xbf16> to vector<32x96xbf16>
    %c0_48 = arith.constant 0 : index
    %c64 = arith.constant 64 : index
    %c0_49 = arith.constant 0 : index
    %148 = vector.load %arg4[%c0_48, %c64, %c0_49] : memref<2x160x96xbf16, #tpu.memory_space<vmem>>, vector<1x32x64xbf16>
    %149 = vector.shape_cast %148 : vector<1x32x64xbf16> to vector<32x64xbf16>
    %c0_50 = arith.constant 0 : index
    %c96 = arith.constant 96 : index
    %c0_51 = arith.constant 0 : index
    %150 = vector.load %arg4[%c0_50, %c96, %c0_51] : memref<2x160x96xbf16, #tpu.memory_space<vmem>>, vector<1x64x32xbf16>
    %151 = vector.shape_cast %150 : vector<1x64x32xbf16> to vector<64x32xbf16>
    %c0_52 = arith.constant 0 : index
    %c0_53 = arith.constant 0 : index
    %c0_54 = arith.constant 0 : index
    %152 = vector.load %arg5[%c0_52, %c0_53, %c0_54] : memref<2x128x96xf32, #tpu.memory_space<vmem>>, vector<1x16x96xf32>
    %153 = vector.shape_cast %152 : vector<1x16x96xf32> to vector<16x96xf32>
    %c0_55 = arith.constant 0 : index
    %c16_56 = arith.constant 16 : index
    %c0_57 = arith.constant 0 : index
    %154 = vector.load %arg5[%c0_55, %c16_56, %c0_57] : memref<2x128x96xf32, #tpu.memory_space<vmem>>, vector<1x16x64xf32>
    %155 = vector.shape_cast %154 : vector<1x16x64xf32> to vector<16x64xf32>
    %c0_58 = arith.constant 0 : index
    %c32_59 = arith.constant 32 : index
    %c0_60 = arith.constant 0 : index
    %156 = vector.load %arg5[%c0_58, %c32_59, %c0_60] : memref<2x128x96xf32, #tpu.memory_space<vmem>>, vector<1x16x32xf32>
    %157 = vector.shape_cast %156 : vector<1x16x32xf32> to vector<16x32xf32>
    %c0_61 = arith.constant 0 : index
    %c48 = arith.constant 48 : index
    %c0_62 = arith.constant 0 : index
    %158 = vector.load %arg5[%c0_61, %c48, %c0_62] : memref<2x128x96xf32, #tpu.memory_space<vmem>>, vector<1x16x32xf32>
    %159 = vector.shape_cast %158 : vector<1x16x32xf32> to vector<16x32xf32>
    %c0_63 = arith.constant 0 : index
    %c64_64 = arith.constant 64 : index
    %c0_65 = arith.constant 0 : index
    %160 = vector.load %arg5[%c0_63, %c64_64, %c0_65] : memref<2x128x96xf32, #tpu.memory_space<vmem>>, vector<1x16x32xf32>
    %161 = vector.shape_cast %160 : vector<1x16x32xf32> to vector<16x32xf32>
    %c0_66 = arith.constant 0 : index
    %c80 = arith.constant 80 : index
    %c0_67 = arith.constant 0 : index
    %162 = vector.load %arg5[%c0_66, %c80, %c0_67] : memref<2x128x96xf32, #tpu.memory_space<vmem>>, vector<1x16x32xf32>
    %163 = vector.shape_cast %162 : vector<1x16x32xf32> to vector<16x32xf32>
    %c0_68 = arith.constant 0 : index
    %c96_69 = arith.constant 96 : index
    %c0_70 = arith.constant 0 : index
    %164 = vector.load %arg5[%c0_68, %c96_69, %c0_70] : memref<2x128x96xf32, #tpu.memory_space<vmem>>, vector<1x16x32xf32>
    %165 = vector.shape_cast %164 : vector<1x16x32xf32> to vector<16x32xf32>
    %c0_71 = arith.constant 0 : index
    %c112 = arith.constant 112 : index
    %c0_72 = arith.constant 0 : index
    %166 = vector.load %arg5[%c0_71, %c112, %c0_72] : memref<2x128x96xf32, #tpu.memory_space<vmem>>, vector<1x16x32xf32>
    %167 = vector.shape_cast %166 : vector<1x16x32xf32> to vector<16x32xf32>
    %168 = arith.truncf %144 : vector<16x32xf32> to vector<16x32xbf16>
    %cst = arith.constant dense<0.000000e+00> : vector<16x96xf32>
    %169 = tpu.matmul %168, %147, %cst {dimension_numbers = #tpu.dot_dimension_numbers<[1], [0], [0], [1], [0, 0, 1, 1], [], []>} : vector<16x32xbf16>, vector<32x96xbf16>, vector<16x96xf32> -> vector<16x96xf32>
    %170 = arith.addf %169, %153 : vector<16x96xf32>
    %171 = vector.extract_strided_slice %170 {offsets = [0, 0], sizes = [16, 16], strides = [1, 1]} : vector<16x96xf32> to vector<16x16xf32>
    %172 = vector.extract_strided_slice %170 {offsets = [0, 32], sizes = [16, 16], strides = [1, 1]} : vector<16x96xf32> to vector<16x16xf32>
    %173 = vector.extract_strided_slice %170 {offsets = [0, 64], sizes = [16, 16], strides = [1, 1]} : vector<16x96xf32> to vector<16x16xf32>
    %cst_73 = arith.constant dense<0.000000e+00> : vector<16x16xf32>
    %174 = tpu.matmul %171, %172, %cst_73 {dimension_numbers = #tpu.dot_dimension_numbers<[1], [1], [0], [0], [0, 0, 1, 0], [], []>} : vector<16x16xf32>, vector<16x16xf32>, vector<16x16xf32> -> vector<16x16xf32>
    %cst_74 = arith.constant 2.500000e-01 : f32
    %175 = vector.broadcast %cst_74 : f32 to vector<16x16xf32>
    %176 = arith.mulf %174, %175 : vector<16x16xf32>
    %177 = arith.addf %176, %145 : vector<16x16xf32>
    %178 = math.exp %177 : vector<16x16xf32>
    %cst_75 = arith.constant dense<0.000000e+00> : vector<16xf32>
    %179 = vector.multi_reduction <add>, %178, %cst_75 [1] : vector<16x16xf32> to vector<16xf32>
    %180 = vector.shape_cast %179 : vector<16xf32> to vector<16x1xf32>
    %181 = tpu.reciprocal %180 {approx = true} : vector<16x1xf32> -> vector<16x1xf32>
    %cst_76 = arith.constant dense<0.000000e+00> : vector<16x16xf32>
    %182 = tpu.matmul %178, %173, %cst_76 {dimension_numbers = #tpu.dot_dimension_numbers<[1], [0], [0], [1], [0, 0, 1, 1], [], []>} : vector<16x16xf32>, vector<16x16xf32>, vector<16x16xf32> -> vector<16x16xf32>
    %c0_77 = arith.constant 0 : index
    %c32_78 = arith.constant 32 : index
    %c0_79 = arith.constant 0 : index
    %183 = vector.load %arg4[%c0_77, %c32_78, %c0_79] : memref<2x160x96xbf16, #tpu.memory_space<vmem>>, vector<1x16x32xbf16>
    %184 = vector.shape_cast %183 : vector<1x16x32xbf16> to vector<16x32xbf16>
    %185 = arith.truncf %182 : vector<16x16xf32> to vector<16x16xbf16>
    %cst_80 = arith.constant dense<0.000000e+00> : vector<16x32xf32>
    %186 = tpu.matmul %185, %184, %cst_80 {dimension_numbers = #tpu.dot_dimension_numbers<[1], [0], [0], [1], [0, 0, 1, 1], [], []>} : vector<16x16xbf16>, vector<16x32xbf16>, vector<16x32xf32> -> vector<16x32xf32>
    %187 = vector.broadcast %181 : vector<16x1xf32> to vector<16x32xf32>
    %188 = arith.mulf %186, %187 : vector<16x32xf32>
    %189 = arith.addf %157, %188 : vector<16x32xf32>
    %190 = vector.extract_strided_slice %170 {offsets = [0, 16], sizes = [16, 16], strides = [1, 1]} : vector<16x96xf32> to vector<16x16xf32>
    %191 = vector.extract_strided_slice %170 {offsets = [0, 48], sizes = [16, 16], strides = [1, 1]} : vector<16x96xf32> to vector<16x16xf32>
    %192 = vector.extract_strided_slice %170 {offsets = [0, 80], sizes = [16, 16], strides = [1, 1]} : vector<16x96xf32> to vector<16x16xf32>
    %cst_81 = arith.constant dense<0.000000e+00> : vector<16x16xf32>
    %193 = tpu.matmul %190, %191, %cst_81 {dimension_numbers = #tpu.dot_dimension_numbers<[1], [1], [0], [0], [0, 0, 1, 0], [], []>} : vector<16x16xf32>, vector<16x16xf32>, vector<16x16xf32> -> vector<16x16xf32>
    %cst_82 = arith.constant 2.500000e-01 : f32
    %194 = vector.broadcast %cst_82 : f32 to vector<16x16xf32>
    %195 = arith.mulf %193, %194 : vector<16x16xf32>
    %196 = arith.addf %195, %145 : vector<16x16xf32>
    %197 = math.exp %196 : vector<16x16xf32>
    %cst_83 = arith.constant dense<0.000000e+00> : vector<16xf32>
    %198 = vector.multi_reduction <add>, %197, %cst_83 [1] : vector<16x16xf32> to vector<16xf32>
    %199 = vector.shape_cast %198 : vector<16xf32> to vector<16x1xf32>
    %200 = tpu.reciprocal %199 {approx = true} : vector<16x1xf32> -> vector<16x1xf32>
    %cst_84 = arith.constant dense<0.000000e+00> : vector<16x16xf32>
    %201 = tpu.matmul %197, %192, %cst_84 {dimension_numbers = #tpu.dot_dimension_numbers<[1], [0], [0], [1], [0, 0, 1, 1], [], []>} : vector<16x16xf32>, vector<16x16xf32>, vector<16x16xf32> -> vector<16x16xf32>
    %c0_85 = arith.constant 0 : index
    %c48_86 = arith.constant 48 : index
    %c0_87 = arith.constant 0 : index
    %202 = vector.load %arg4[%c0_85, %c48_86, %c0_87] : memref<2x160x96xbf16, #tpu.memory_space<vmem>>, vector<1x16x32xbf16>
    %203 = vector.shape_cast %202 : vector<1x16x32xbf16> to vector<16x32xbf16>
    %204 = arith.truncf %201 : vector<16x16xf32> to vector<16x16xbf16>
    %cst_88 = arith.constant dense<0.000000e+00> : vector<16x32xf32>
    %205 = tpu.matmul %204, %203, %cst_88 {dimension_numbers = #tpu.dot_dimension_numbers<[1], [0], [0], [1], [0, 0, 1, 1], [], []>} : vector<16x16xbf16>, vector<16x32xbf16>, vector<16x32xf32> -> vector<16x32xf32>
    %206 = vector.broadcast %200 : vector<16x1xf32> to vector<16x32xf32>
    %207 = arith.mulf %205, %206 : vector<16x32xf32>
    %208 = arith.addf %189, %207 : vector<16x32xf32>
    %209 = arith.addf %144, %208 : vector<16x32xf32>
    %cst_89 = arith.constant dense<0.000000e+00> : vector<16xf32>
    %210 = vector.multi_reduction <add>, %209, %cst_89 [1] : vector<16x32xf32> to vector<16xf32>
    %211 = vector.shape_cast %210 : vector<16xf32> to vector<16x1xf32>
    %cst_90 = arith.constant 3.200000e+01 : f32
    %212 = vector.broadcast %cst_90 : f32 to vector<16x1xf32>
    %213 = arith.divf %211, %212 : vector<16x1xf32>
    %214 = arith.mulf %209, %209 : vector<16x32xf32>
    %cst_91 = arith.constant dense<0.000000e+00> : vector<16xf32>
    %215 = vector.multi_reduction <add>, %214, %cst_91 [1] : vector<16x32xf32> to vector<16xf32>
    %216 = vector.shape_cast %215 : vector<16xf32> to vector<16x1xf32>
    %cst_92 = arith.constant 3.200000e+01 : f32
    %217 = vector.broadcast %cst_92 : f32 to vector<16x1xf32>
    %218 = arith.divf %216, %217 : vector<16x1xf32>
    %219 = arith.mulf %213, %213 : vector<16x1xf32>
    %220 = arith.subf %218, %219 : vector<16x1xf32>
    %cst_93 = arith.constant 9.99999974E-6 : f32
    %221 = vector.broadcast %cst_93 : f32 to vector<16x1xf32>
    %222 = arith.addf %220, %221 : vector<16x1xf32>
    %223 = math.rsqrt %222 : vector<16x1xf32>
    %224 = vector.broadcast %213 : vector<16x1xf32> to vector<16x32xf32>
    %225 = arith.subf %209, %224 : vector<16x32xf32>
    %226 = vector.broadcast %223 : vector<16x1xf32> to vector<16x32xf32>
    %227 = arith.mulf %225, %226 : vector<16x32xf32>
    %228 = arith.mulf %227, %161 : vector<16x32xf32>
    %229 = arith.addf %228, %163 : vector<16x32xf32>
    %230 = arith.truncf %229 : vector<16x32xf32> to vector<16x32xbf16>
    %cst_94 = arith.constant dense<0.000000e+00> : vector<16x64xf32>
    %231 = tpu.matmul %230, %149, %cst_94 {dimension_numbers = #tpu.dot_dimension_numbers<[1], [0], [0], [1], [0, 0, 1, 1], [], []>} : vector<16x32xbf16>, vector<32x64xbf16>, vector<16x64xf32> -> vector<16x64xf32>
    %232 = arith.addf %231, %155 : vector<16x64xf32>
    %cst_95 = arith.constant 0.000000e+00 : f32
    %233 = vector.broadcast %cst_95 : f32 to vector<16x64xf32>
    %234 = arith.maximumf %232, %233 : vector<16x64xf32>
    %235 = arith.truncf %234 : vector<16x64xf32> to vector<16x64xbf16>
    %cst_96 = arith.constant dense<0.000000e+00> : vector<16x32xf32>
    %236 = tpu.matmul %235, %151, %cst_96 {dimension_numbers = #tpu.dot_dimension_numbers<[1], [0], [0], [1], [0, 0, 1, 1], [], []>} : vector<16x64xbf16>, vector<64x32xbf16>, vector<16x32xf32> -> vector<16x32xf32>
    %237 = arith.addf %236, %159 : vector<16x32xf32>
    %238 = arith.addf %229, %237 : vector<16x32xf32>
    %cst_97 = arith.constant dense<0.000000e+00> : vector<16xf32>
    %239 = vector.multi_reduction <add>, %238, %cst_97 [1] : vector<16x32xf32> to vector<16xf32>
    %240 = vector.shape_cast %239 : vector<16xf32> to vector<16x1xf32>
    %cst_98 = arith.constant 3.200000e+01 : f32
    %241 = vector.broadcast %cst_98 : f32 to vector<16x1xf32>
    %242 = arith.divf %240, %241 : vector<16x1xf32>
    %243 = arith.mulf %238, %238 : vector<16x32xf32>
    %cst_99 = arith.constant dense<0.000000e+00> : vector<16xf32>
    %244 = vector.multi_reduction <add>, %243, %cst_99 [1] : vector<16x32xf32> to vector<16xf32>
    %245 = vector.shape_cast %244 : vector<16xf32> to vector<16x1xf32>
    %cst_100 = arith.constant 3.200000e+01 : f32
    %246 = vector.broadcast %cst_100 : f32 to vector<16x1xf32>
    %247 = arith.divf %245, %246 : vector<16x1xf32>
    %248 = arith.mulf %242, %242 : vector<16x1xf32>
    %249 = arith.subf %247, %248 : vector<16x1xf32>
    %cst_101 = arith.constant 9.99999974E-6 : f32
    %250 = vector.broadcast %cst_101 : f32 to vector<16x1xf32>
    %251 = arith.addf %249, %250 : vector<16x1xf32>
    %252 = math.rsqrt %251 : vector<16x1xf32>
    %253 = vector.broadcast %242 : vector<16x1xf32> to vector<16x32xf32>
    %254 = arith.subf %238, %253 : vector<16x32xf32>
    %255 = vector.broadcast %252 : vector<16x1xf32> to vector<16x32xf32>
    %256 = arith.mulf %254, %255 : vector<16x32xf32>
    %257 = arith.mulf %256, %165 : vector<16x32xf32>
    %258 = arith.addf %257, %167 : vector<16x32xf32>
    %c1_102 = arith.constant 1 : index
    %c0_103 = arith.constant 0 : index
    %c0_104 = arith.constant 0 : index
    %259 = vector.load %arg4[%c1_102, %c0_103, %c0_104] : memref<2x160x96xbf16, #tpu.memory_space<vmem>>, vector<1x32x96xbf16>
    %260 = vector.shape_cast %259 : vector<1x32x96xbf16> to vector<32x96xbf16>
    %c1_105 = arith.constant 1 : index
    %c64_106 = arith.constant 64 : index
    %c0_107 = arith.constant 0 : index
    %261 = vector.load %arg4[%c1_105, %c64_106, %c0_107] : memref<2x160x96xbf16, #tpu.memory_space<vmem>>, vector<1x32x64xbf16>
    %262 = vector.shape_cast %261 : vector<1x32x64xbf16> to vector<32x64xbf16>
    %c1_108 = arith.constant 1 : index
    %c96_109 = arith.constant 96 : index
    %c0_110 = arith.constant 0 : index
    %263 = vector.load %arg4[%c1_108, %c96_109, %c0_110] : memref<2x160x96xbf16, #tpu.memory_space<vmem>>, vector<1x64x32xbf16>
    %264 = vector.shape_cast %263 : vector<1x64x32xbf16> to vector<64x32xbf16>
    %c1_111 = arith.constant 1 : index
    %c0_112 = arith.constant 0 : index
    %c0_113 = arith.constant 0 : index
    %265 = vector.load %arg5[%c1_111, %c0_112, %c0_113] : memref<2x128x96xf32, #tpu.memory_space<vmem>>, vector<1x16x96xf32>
    %266 = vector.shape_cast %265 : vector<1x16x96xf32> to vector<16x96xf32>
    %c1_114 = arith.constant 1 : index
    %c16_115 = arith.constant 16 : index
    %c0_116 = arith.constant 0 : index
    %267 = vector.load %arg5[%c1_114, %c16_115, %c0_116] : memref<2x128x96xf32, #tpu.memory_space<vmem>>, vector<1x16x64xf32>
    %268 = vector.shape_cast %267 : vector<1x16x64xf32> to vector<16x64xf32>
    %c1_117 = arith.constant 1 : index
    %c32_118 = arith.constant 32 : index
    %c0_119 = arith.constant 0 : index
    %269 = vector.load %arg5[%c1_117, %c32_118, %c0_119] : memref<2x128x96xf32, #tpu.memory_space<vmem>>, vector<1x16x32xf32>
    %270 = vector.shape_cast %269 : vector<1x16x32xf32> to vector<16x32xf32>
    %c1_120 = arith.constant 1 : index
    %c48_121 = arith.constant 48 : index
    %c0_122 = arith.constant 0 : index
    %271 = vector.load %arg5[%c1_120, %c48_121, %c0_122] : memref<2x128x96xf32, #tpu.memory_space<vmem>>, vector<1x16x32xf32>
    %272 = vector.shape_cast %271 : vector<1x16x32xf32> to vector<16x32xf32>
    %c1_123 = arith.constant 1 : index
    %c64_124 = arith.constant 64 : index
    %c0_125 = arith.constant 0 : index
    %273 = vector.load %arg5[%c1_123, %c64_124, %c0_125] : memref<2x128x96xf32, #tpu.memory_space<vmem>>, vector<1x16x32xf32>
    %274 = vector.shape_cast %273 : vector<1x16x32xf32> to vector<16x32xf32>
    %c1_126 = arith.constant 1 : index
    %c80_127 = arith.constant 80 : index
    %c0_128 = arith.constant 0 : index
    %275 = vector.load %arg5[%c1_126, %c80_127, %c0_128] : memref<2x128x96xf32, #tpu.memory_space<vmem>>, vector<1x16x32xf32>
    %276 = vector.shape_cast %275 : vector<1x16x32xf32> to vector<16x32xf32>
    %c1_129 = arith.constant 1 : index
    %c96_130 = arith.constant 96 : index
    %c0_131 = arith.constant 0 : index
    %277 = vector.load %arg5[%c1_129, %c96_130, %c0_131] : memref<2x128x96xf32, #tpu.memory_space<vmem>>, vector<1x16x32xf32>
    %278 = vector.shape_cast %277 : vector<1x16x32xf32> to vector<16x32xf32>
    %c1_132 = arith.constant 1 : index
    %c112_133 = arith.constant 112 : index
    %c0_134 = arith.constant 0 : index
    %279 = vector.load %arg5[%c1_132, %c112_133, %c0_134] : memref<2x128x96xf32, #tpu.memory_space<vmem>>, vector<1x16x32xf32>
    %280 = vector.shape_cast %279 : vector<1x16x32xf32> to vector<16x32xf32>
    %281 = arith.truncf %258 : vector<16x32xf32> to vector<16x32xbf16>
    %cst_135 = arith.constant dense<0.000000e+00> : vector<16x96xf32>
    %282 = tpu.matmul %281, %260, %cst_135 {dimension_numbers = #tpu.dot_dimension_numbers<[1], [0], [0], [1], [0, 0, 1, 1], [], []>} : vector<16x32xbf16>, vector<32x96xbf16>, vector<16x96xf32> -> vector<16x96xf32>
    %283 = arith.addf %282, %266 : vector<16x96xf32>
    %284 = vector.extract_strided_slice %283 {offsets = [0, 0], sizes = [16, 16], strides = [1, 1]} : vector<16x96xf32> to vector<16x16xf32>
    %285 = vector.extract_strided_slice %283 {offsets = [0, 32], sizes = [16, 16], strides = [1, 1]} : vector<16x96xf32> to vector<16x16xf32>
    %286 = vector.extract_strided_slice %283 {offsets = [0, 64], sizes = [16, 16], strides = [1, 1]} : vector<16x96xf32> to vector<16x16xf32>
    %cst_136 = arith.constant dense<0.000000e+00> : vector<16x16xf32>
    %287 = tpu.matmul %284, %285, %cst_136 {dimension_numbers = #tpu.dot_dimension_numbers<[1], [1], [0], [0], [0, 0, 1, 0], [], []>} : vector<16x16xf32>, vector<16x16xf32>, vector<16x16xf32> -> vector<16x16xf32>
    %cst_137 = arith.constant 2.500000e-01 : f32
    %288 = vector.broadcast %cst_137 : f32 to vector<16x16xf32>
    %289 = arith.mulf %287, %288 : vector<16x16xf32>
    %290 = arith.addf %289, %145 : vector<16x16xf32>
    %291 = math.exp %290 : vector<16x16xf32>
    %cst_138 = arith.constant dense<0.000000e+00> : vector<16xf32>
    %292 = vector.multi_reduction <add>, %291, %cst_138 [1] : vector<16x16xf32> to vector<16xf32>
    %293 = vector.shape_cast %292 : vector<16xf32> to vector<16x1xf32>
    %294 = tpu.reciprocal %293 {approx = true} : vector<16x1xf32> -> vector<16x1xf32>
    %cst_139 = arith.constant dense<0.000000e+00> : vector<16x16xf32>
    %295 = tpu.matmul %291, %286, %cst_139 {dimension_numbers = #tpu.dot_dimension_numbers<[1], [0], [0], [1], [0, 0, 1, 1], [], []>} : vector<16x16xf32>, vector<16x16xf32>, vector<16x16xf32> -> vector<16x16xf32>
    %c1_140 = arith.constant 1 : index
    %c32_141 = arith.constant 32 : index
    %c0_142 = arith.constant 0 : index
    %296 = vector.load %arg4[%c1_140, %c32_141, %c0_142] : memref<2x160x96xbf16, #tpu.memory_space<vmem>>, vector<1x16x32xbf16>
    %297 = vector.shape_cast %296 : vector<1x16x32xbf16> to vector<16x32xbf16>
    %298 = arith.truncf %295 : vector<16x16xf32> to vector<16x16xbf16>
    %cst_143 = arith.constant dense<0.000000e+00> : vector<16x32xf32>
    %299 = tpu.matmul %298, %297, %cst_143 {dimension_numbers = #tpu.dot_dimension_numbers<[1], [0], [0], [1], [0, 0, 1, 1], [], []>} : vector<16x16xbf16>, vector<16x32xbf16>, vector<16x32xf32> -> vector<16x32xf32>
    %300 = vector.broadcast %294 : vector<16x1xf32> to vector<16x32xf32>
    %301 = arith.mulf %299, %300 : vector<16x32xf32>
    %302 = arith.addf %270, %301 : vector<16x32xf32>
    %303 = vector.extract_strided_slice %283 {offsets = [0, 16], sizes = [16, 16], strides = [1, 1]} : vector<16x96xf32> to vector<16x16xf32>
    %304 = vector.extract_strided_slice %283 {offsets = [0, 48], sizes = [16, 16], strides = [1, 1]} : vector<16x96xf32> to vector<16x16xf32>
    %305 = vector.extract_strided_slice %283 {offsets = [0, 80], sizes = [16, 16], strides = [1, 1]} : vector<16x96xf32> to vector<16x16xf32>
    %cst_144 = arith.constant dense<0.000000e+00> : vector<16x16xf32>
    %306 = tpu.matmul %303, %304, %cst_144 {dimension_numbers = #tpu.dot_dimension_numbers<[1], [1], [0], [0], [0, 0, 1, 0], [], []>} : vector<16x16xf32>, vector<16x16xf32>, vector<16x16xf32> -> vector<16x16xf32>
    %cst_145 = arith.constant 2.500000e-01 : f32
    %307 = vector.broadcast %cst_145 : f32 to vector<16x16xf32>
    %308 = arith.mulf %306, %307 : vector<16x16xf32>
    %309 = arith.addf %308, %145 : vector<16x16xf32>
    %310 = math.exp %309 : vector<16x16xf32>
    %cst_146 = arith.constant dense<0.000000e+00> : vector<16xf32>
    %311 = vector.multi_reduction <add>, %310, %cst_146 [1] : vector<16x16xf32> to vector<16xf32>
    %312 = vector.shape_cast %311 : vector<16xf32> to vector<16x1xf32>
    %313 = tpu.reciprocal %312 {approx = true} : vector<16x1xf32> -> vector<16x1xf32>
    %cst_147 = arith.constant dense<0.000000e+00> : vector<16x16xf32>
    %314 = tpu.matmul %310, %305, %cst_147 {dimension_numbers = #tpu.dot_dimension_numbers<[1], [0], [0], [1], [0, 0, 1, 1], [], []>} : vector<16x16xf32>, vector<16x16xf32>, vector<16x16xf32> -> vector<16x16xf32>
    %c1_148 = arith.constant 1 : index
    %c48_149 = arith.constant 48 : index
    %c0_150 = arith.constant 0 : index
    %315 = vector.load %arg4[%c1_148, %c48_149, %c0_150] : memref<2x160x96xbf16, #tpu.memory_space<vmem>>, vector<1x16x32xbf16>
    %316 = vector.shape_cast %315 : vector<1x16x32xbf16> to vector<16x32xbf16>
    %317 = arith.truncf %314 : vector<16x16xf32> to vector<16x16xbf16>
    %cst_151 = arith.constant dense<0.000000e+00> : vector<16x32xf32>
    %318 = tpu.matmul %317, %316, %cst_151 {dimension_numbers = #tpu.dot_dimension_numbers<[1], [0], [0], [1], [0, 0, 1, 1], [], []>} : vector<16x16xbf16>, vector<16x32xbf16>, vector<16x32xf32> -> vector<16x32xf32>
    %319 = vector.broadcast %313 : vector<16x1xf32> to vector<16x32xf32>
    %320 = arith.mulf %318, %319 : vector<16x32xf32>
    %321 = arith.addf %302, %320 : vector<16x32xf32>
    %322 = arith.addf %258, %321 : vector<16x32xf32>
    %cst_152 = arith.constant dense<0.000000e+00> : vector<16xf32>
    %323 = vector.multi_reduction <add>, %322, %cst_152 [1] : vector<16x32xf32> to vector<16xf32>
    %324 = vector.shape_cast %323 : vector<16xf32> to vector<16x1xf32>
    %cst_153 = arith.constant 3.200000e+01 : f32
    %325 = vector.broadcast %cst_153 : f32 to vector<16x1xf32>
    %326 = arith.divf %324, %325 : vector<16x1xf32>
    %327 = arith.mulf %322, %322 : vector<16x32xf32>
    %cst_154 = arith.constant dense<0.000000e+00> : vector<16xf32>
    %328 = vector.multi_reduction <add>, %327, %cst_154 [1] : vector<16x32xf32> to vector<16xf32>
    %329 = vector.shape_cast %328 : vector<16xf32> to vector<16x1xf32>
    %cst_155 = arith.constant 3.200000e+01 : f32
    %330 = vector.broadcast %cst_155 : f32 to vector<16x1xf32>
    %331 = arith.divf %329, %330 : vector<16x1xf32>
    %332 = arith.mulf %326, %326 : vector<16x1xf32>
    %333 = arith.subf %331, %332 : vector<16x1xf32>
    %cst_156 = arith.constant 9.99999974E-6 : f32
    %334 = vector.broadcast %cst_156 : f32 to vector<16x1xf32>
    %335 = arith.addf %333, %334 : vector<16x1xf32>
    %336 = math.rsqrt %335 : vector<16x1xf32>
    %337 = vector.broadcast %326 : vector<16x1xf32> to vector<16x32xf32>
    %338 = arith.subf %322, %337 : vector<16x32xf32>
    %339 = vector.broadcast %336 : vector<16x1xf32> to vector<16x32xf32>
    %340 = arith.mulf %338, %339 : vector<16x32xf32>
    %341 = arith.mulf %340, %274 : vector<16x32xf32>
    %342 = arith.addf %341, %276 : vector<16x32xf32>
    %343 = arith.truncf %342 : vector<16x32xf32> to vector<16x32xbf16>
    %cst_157 = arith.constant dense<0.000000e+00> : vector<16x64xf32>
    %344 = tpu.matmul %343, %262, %cst_157 {dimension_numbers = #tpu.dot_dimension_numbers<[1], [0], [0], [1], [0, 0, 1, 1], [], []>} : vector<16x32xbf16>, vector<32x64xbf16>, vector<16x64xf32> -> vector<16x64xf32>
    %345 = arith.addf %344, %268 : vector<16x64xf32>
    %cst_158 = arith.constant 0.000000e+00 : f32
    %346 = vector.broadcast %cst_158 : f32 to vector<16x64xf32>
    %347 = arith.maximumf %345, %346 : vector<16x64xf32>
    %348 = arith.truncf %347 : vector<16x64xf32> to vector<16x64xbf16>
    %cst_159 = arith.constant dense<0.000000e+00> : vector<16x32xf32>
    %349 = tpu.matmul %348, %264, %cst_159 {dimension_numbers = #tpu.dot_dimension_numbers<[1], [0], [0], [1], [0, 0, 1, 1], [], []>} : vector<16x64xbf16>, vector<64x32xbf16>, vector<16x32xf32> -> vector<16x32xf32>
    %350 = arith.addf %349, %272 : vector<16x32xf32>
    %351 = arith.addf %342, %350 : vector<16x32xf32>
    %cst_160 = arith.constant dense<0.000000e+00> : vector<16xf32>
    %352 = vector.multi_reduction <add>, %351, %cst_160 [1] : vector<16x32xf32> to vector<16xf32>
    %353 = vector.shape_cast %352 : vector<16xf32> to vector<16x1xf32>
    %cst_161 = arith.constant 3.200000e+01 : f32
    %354 = vector.broadcast %cst_161 : f32 to vector<16x1xf32>
    %355 = arith.divf %353, %354 : vector<16x1xf32>
    %356 = arith.mulf %351, %351 : vector<16x32xf32>
    %cst_162 = arith.constant dense<0.000000e+00> : vector<16xf32>
    %357 = vector.multi_reduction <add>, %356, %cst_162 [1] : vector<16x32xf32> to vector<16xf32>
    %358 = vector.shape_cast %357 : vector<16xf32> to vector<16x1xf32>
    %cst_163 = arith.constant 3.200000e+01 : f32
    %359 = vector.broadcast %cst_163 : f32 to vector<16x1xf32>
    %360 = arith.divf %358, %359 : vector<16x1xf32>
    %361 = arith.mulf %355, %355 : vector<16x1xf32>
    %362 = arith.subf %360, %361 : vector<16x1xf32>
    %cst_164 = arith.constant 9.99999974E-6 : f32
    %363 = vector.broadcast %cst_164 : f32 to vector<16x1xf32>
    %364 = arith.addf %362, %363 : vector<16x1xf32>
    %365 = math.rsqrt %364 : vector<16x1xf32>
    %366 = vector.broadcast %355 : vector<16x1xf32> to vector<16x32xf32>
    %367 = arith.subf %351, %366 : vector<16x32xf32>
    %368 = vector.broadcast %365 : vector<16x1xf32> to vector<16x32xf32>
    %369 = arith.mulf %367, %368 : vector<16x32xf32>
    %370 = arith.mulf %369, %278 : vector<16x32xf32>
    %371 = arith.addf %370, %280 : vector<16x32xf32>
    %c48_165 = arith.constant 48 : index
    %c0_166 = arith.constant 0 : index
    %372 = vector.load %arg3[%c48_165, %c0_166] : memref<128x128xf32, #tpu.memory_space<vmem>>, vector<2x16xf32>
    %cst_167 = arith.constant dense<0.000000e+00> : vector<2x32xf32>
    %373 = tpu.matmul %372, %371, %cst_167 {dimension_numbers = #tpu.dot_dimension_numbers<[1], [0], [0], [1], [0, 0, 1, 1], [], []>} : vector<2x16xf32>, vector<16x32xf32>, vector<2x32xf32> -> vector<2x32xf32>
    %374 = tpu.iota {dimensions = array<i32: 0>} : vector<2x1xi32>
    %c0_i32_168 = arith.constant 0 : i32
    %375 = vector.broadcast %c0_i32_168 : i32 to vector<2x1xi32>
    %c0_i32_169 = arith.constant 0 : i32
    %376 = vector.broadcast %c0_i32_169 : i32 to vector<2x1xi32>
    %377 = arith.cmpi eq, %374, %376 : vector<2x1xi32>
    %c0_170 = arith.constant 0 : index
    %c0_171 = arith.constant 0 : index
    %378 = memref.load %arg2[%c0_170, %c0_171] : memref<2x8xi32, #tpu.memory_space<smem>>
    %379 = vector.broadcast %378 : i32 to vector<2x1xi32>
    %380 = arith.select %377, %379, %375 : vector<2x1xi1>, vector<2x1xi32>
    %c1_i32_172 = arith.constant 1 : i32
    %381 = vector.broadcast %c1_i32_172 : i32 to vector<2x1xi32>
    %382 = arith.cmpi eq, %374, %381 : vector<2x1xi32>
    %c1_173 = arith.constant 1 : index
    %c0_174 = arith.constant 0 : index
    %383 = memref.load %arg2[%c1_173, %c0_174] : memref<2x8xi32, #tpu.memory_space<smem>>
    %384 = vector.broadcast %383 : i32 to vector<2x1xi32>
    %385 = arith.select %382, %384, %380 : vector<2x1xi1>, vector<2x1xi32>
    %cst_175 = arith.constant 0.000000e+00 : f32
    %386 = vector.broadcast %cst_175 : f32 to vector<2x24xf32>
    %c0_i32_176 = arith.constant 0 : i32
    %387 = vector.broadcast %c0_i32_176 : i32 to vector<2x1xi32>
    %388 = arith.cmpi eq, %385, %387 : vector<2x1xi32>
    %389 = arith.extui %388 : vector<2x1xi1> to vector<2x1xi32>
    %390 = arith.sitofp %389 : vector<2x1xi32> to vector<2x1xf32>
    %c88 = arith.constant 88 : index
    %c0_177 = arith.constant 0 : index
    %391 = vector.load %arg3[%c88, %c0_177] : memref<128x128xf32, #tpu.memory_space<vmem>>, vector<1x24xf32>
    %392 = vector.broadcast %390 : vector<2x1xf32> to vector<2x24xf32>
    %393 = vector.broadcast %391 : vector<1x24xf32> to vector<2x24xf32>
    %394 = arith.mulf %392, %393 : vector<2x24xf32>
    %395 = arith.addf %386, %394 : vector<2x24xf32>
    %c1_i32_178 = arith.constant 1 : i32
    %396 = vector.broadcast %c1_i32_178 : i32 to vector<2x1xi32>
    %397 = arith.cmpi eq, %385, %396 : vector<2x1xi32>
    %398 = arith.extui %397 : vector<2x1xi1> to vector<2x1xi32>
    %399 = arith.sitofp %398 : vector<2x1xi32> to vector<2x1xf32>
    %c89 = arith.constant 89 : index
    %c0_179 = arith.constant 0 : index
    %400 = vector.load %arg3[%c89, %c0_179] : memref<128x128xf32, #tpu.memory_space<vmem>>, vector<1x24xf32>
    %401 = vector.broadcast %399 : vector<2x1xf32> to vector<2x24xf32>
    %402 = vector.broadcast %400 : vector<1x24xf32> to vector<2x24xf32>
    %403 = arith.mulf %401, %402 : vector<2x24xf32>
    %404 = arith.addf %395, %403 : vector<2x24xf32>
    %c2_i32_180 = arith.constant 2 : i32
    %405 = vector.broadcast %c2_i32_180 : i32 to vector<2x1xi32>
    %406 = arith.cmpi eq, %385, %405 : vector<2x1xi32>
    %407 = arith.extui %406 : vector<2x1xi1> to vector<2x1xi32>
    %408 = arith.sitofp %407 : vector<2x1xi32> to vector<2x1xf32>
    %c90 = arith.constant 90 : index
    %c0_181 = arith.constant 0 : index
    %409 = vector.load %arg3[%c90, %c0_181] : memref<128x128xf32, #tpu.memory_space<vmem>>, vector<1x24xf32>
    %410 = vector.broadcast %408 : vector<2x1xf32> to vector<2x24xf32>
    %411 = vector.broadcast %409 : vector<1x24xf32> to vector<2x24xf32>
    %412 = arith.mulf %410, %411 : vector<2x24xf32>
    %413 = arith.addf %404, %412 : vector<2x24xf32>
    %c3_i32_182 = arith.constant 3 : i32
    %414 = vector.broadcast %c3_i32_182 : i32 to vector<2x1xi32>
    %415 = arith.cmpi eq, %385, %414 : vector<2x1xi32>
    %416 = arith.extui %415 : vector<2x1xi1> to vector<2x1xi32>
    %417 = arith.sitofp %416 : vector<2x1xi32> to vector<2x1xf32>
    %c91 = arith.constant 91 : index
    %c0_183 = arith.constant 0 : index
    %418 = vector.load %arg3[%c91, %c0_183] : memref<128x128xf32, #tpu.memory_space<vmem>>, vector<1x24xf32>
    %419 = vector.broadcast %417 : vector<2x1xf32> to vector<2x24xf32>
    %420 = vector.broadcast %418 : vector<1x24xf32> to vector<2x24xf32>
    %421 = arith.mulf %419, %420 : vector<2x24xf32>
    %422 = arith.addf %413, %421 : vector<2x24xf32>
    %c4_i32_184 = arith.constant 4 : i32
    %423 = vector.broadcast %c4_i32_184 : i32 to vector<2x1xi32>
    %424 = arith.cmpi eq, %385, %423 : vector<2x1xi32>
    %425 = arith.extui %424 : vector<2x1xi1> to vector<2x1xi32>
    %426 = arith.sitofp %425 : vector<2x1xi32> to vector<2x1xf32>
    %c92 = arith.constant 92 : index
    %c0_185 = arith.constant 0 : index
    %427 = vector.load %arg3[%c92, %c0_185] : memref<128x128xf32, #tpu.memory_space<vmem>>, vector<1x24xf32>
    %428 = vector.broadcast %426 : vector<2x1xf32> to vector<2x24xf32>
    %429 = vector.broadcast %427 : vector<1x24xf32> to vector<2x24xf32>
    %430 = arith.mulf %428, %429 : vector<2x24xf32>
    %431 = arith.addf %422, %430 : vector<2x24xf32>
    %c56 = arith.constant 56 : index
    %c0_186 = arith.constant 0 : index
    %432 = vector.load %arg3[%c56, %c0_186] : memref<128x128xf32, #tpu.memory_space<vmem>>, vector<32x24xf32>
    %c96_187 = arith.constant 96 : index
    %c0_188 = arith.constant 0 : index
    %433 = vector.load %arg3[%c96_187, %c0_188] : memref<128x128xf32, #tpu.memory_space<vmem>>, vector<24x16xf32>
    %c120 = arith.constant 120 : index
    %c0_189 = arith.constant 0 : index
    %434 = vector.load %arg3[%c120, %c0_189] : memref<128x128xf32, #tpu.memory_space<vmem>>, vector<2x24xf32>
    %c122 = arith.constant 122 : index
    %c0_190 = arith.constant 0 : index
    %435 = vector.load %arg3[%c122, %c0_190] : memref<128x128xf32, #tpu.memory_space<vmem>>, vector<2x16xf32>
    %cst_191 = arith.constant dense<0.000000e+00> : vector<2x24xf32>
    %436 = tpu.matmul %373, %432, %cst_191 {dimension_numbers = #tpu.dot_dimension_numbers<[1], [0], [0], [1], [0, 0, 1, 1], [], []>} : vector<2x32xf32>, vector<32x24xf32>, vector<2x24xf32> -> vector<2x24xf32>
    %437 = arith.addf %436, %431 : vector<2x24xf32>
    %438 = arith.addf %437, %434 : vector<2x24xf32>
    %cst_192 = arith.constant 0.000000e+00 : f32
    %439 = vector.broadcast %cst_192 : f32 to vector<2x24xf32>
    %440 = arith.maximumf %438, %439 : vector<2x24xf32>
    %cst_193 = arith.constant dense<0.000000e+00> : vector<2x16xf32>
    %441 = tpu.matmul %440, %433, %cst_193 {dimension_numbers = #tpu.dot_dimension_numbers<[1], [0], [0], [1], [0, 0, 1, 1], [], []>} : vector<2x24xf32>, vector<24x16xf32>, vector<2x16xf32> -> vector<2x16xf32>
    %442 = arith.addf %441, %435 : vector<2x16xf32>
    %c0_194 = arith.constant 0 : index
    %c0_195 = arith.constant 0 : index
    %443 = vector.load %arg6[%c0_194, %c0_195] : memref<2x16xf32, #tpu.memory_space<vmem>>, vector<2x16xf32>
    tpu.vector_store %arg6[%c0_194, %c0_195], %442 {strides = array<i32>} : memref<2x16xf32, #tpu.memory_space<vmem>>, vector<2x16xf32>,
    return
  }
}

</mosaic_0001>

<bundles_post_ra>
// kernel: transformer_forward.1
= control target key start
LH: loop header
LB: loop body
LE: loop exit
PB: predicated region body
PF: predicated region fallthrough
CT: control target
= control target key end

     0   :  { %11 = vsyncpa [#allocation3], 0  ;;  %s2150_s0 = inlined_call_operand.vmem [shape: f32[2,8,2], index: 0, kind: input, shape index: {}]   ;;  %s2151_s1 = inlined_call_operand.vmem [shape: s32[2,8], index: 1, kind: input, shape index: {}]   ;;  %s2152_s2 = inlined_call_operand.vmem [shape: s32[2,8], index: 2, kind: input, shape index: {}]   ;;  %s2153_s3 = inlined_call_operand.vmem [shape: f32[128,128], index: 3, kind: input, shape index: {}]   ;;  %s2154_s4 = inlined_call_operand.vmem [shape: bf16[2,160,96], index: 4, kind: input, shape index: {}]   ;;  %s2155_s5 = inlined_call_operand.vmem [shape: f32[2,128,96], index: 5, kind: input, shape index: {}]   ;;  %s2156_s6 = inlined_call_operand.vmem [shape: f32[2,16], index: 6, kind: output, shape index: {}]  }
   0x1   :  { %s20_s23 = sshll.u32 %s2151_s1, 4  ;;  %s21_s23 = int_to_ptr.vmem [resolvable:$true] %s20_s23 }
   0x2   :  { %12 = vsyncpa [#allocation5], 0  ;;  %s29_s26 = sshll.u32 %s2152_s2, 4  ;;  %s1667_s27 = smov [#allocation2]   ;;  %s30_s26 = int_to_ptr.vmem [resolvable:$true] %s29_s26 }
   0x3   :  { %23 = dma.vmem_to_smem %s21_s23, 32, %s1667_s27, [#allocation3]  }
   0x4   :  { %s1668_s28 = smov [#allocation4]  }
   0x5   :  { %32 = dma.vmem_to_smem %s30_s26, 32, %s1668_s28, [#allocation5]  }
   0x6   :  { %1663 = dma.done.wait [#allocation3], 32  }
   0x7   :  { %1664 = vsyncadd [#allocation3], 4294967264 }
   0x8   :  { %1665 = dma.done.wait [#allocation5], 32  }
   0x9   :  { %1666 = vsyncadd [#allocation5], 4294967264 }
   0xa   :  { %47 = sfence }
   0xb   :  { %v1340_v0 = vld [vmem:[%s2150_s0 + $0x8] sm:$0xff]  ;;  %v51_v1 = vld [vmem:[%s2150_s0] sm:$0xff]  ;;  %v1669_v2 = vmov 0   ;;  %v1670_v3 = vmov 1   ;;  %v80_v4 = vlaneseq  ;;  %s1348_s2 = sld [smem:[#allocation2 + $0x80]]  ;;  %v1671_v44 = vmov 0.0  }
   0xc   :  { %1556 = vset.pattern.permute.xlu1 %v1669_v2  ;;  %1554 = vset.pattern.permute.xlu0 %v1669_v2  ;;  %s85_s8 = sld [smem:[#allocation2]]  ;;  %v1524_v21 = vld [vmem:[%s2154_s4 + $0x8] sm:$0xff]  ;;  %v1523_v24 = vld [vmem:[%s2154_s4] sm:$0xff]  ;;  %s1673_s20 = smov 96  }
   0xd   :  { %70 = vperm.xlu1 %1556, %v1340_v0   ;;  %54 = vperm.xlu0 %1554, %v51_v1   ;;  %v1725_v5 = vshrl.u32 %v80_v4, 7  ;;  %s1349_s9 = sld [smem:[#allocation2 + $0x81]]  ;;  %v1579_v43 = vld [vmem:[%s2153_s3 + $0x8] ss:$0 sm:$0xff]  ;;  %v1578_v46 = vld [vmem:[%s2153_s3] ss:$0 sm:$0xff] }
   0xe   :  { %s1341_s0 = sld [smem:[#allocation2 + $0x1]]  ;;  %288 = vmatpush.bf16.msra.mxu0 %v1524_v21  ;;  %v1582_v47 = vld [vmem:[%s2153_s3 + $0x1] ss:$0 sm:$0xff]  ;;  %v1580_v51 = vld [vmem:[%s2153_s3 + $0x9] ss:$0 sm:$0xff]  ;;  %s1675_s22 = smov 64  }
   0xf   :  { %v1728_v6 = vadd.s32 8, %v1725_v5  ;;  %s1350_s10 = sld [smem:[#allocation2 + $0x82]]  ;;  %vm83_vm1 = vcmp.eq.s32.totalorder %v1725_v5, 0  ;;  %vm89_vm3 = vcmp.eq.s32.totalorder %v1725_v5, 1  ;;  %vm95_vm5 = vcmp.eq.s32.totalorder %v1725_v5, 2  ;;  %s1676_s23 = smov 112  }
  0x10   :  { %s1342_s11 = sld [smem:[#allocation2 + $0x2]]  ;;  %vm101_vm7 = vcmp.eq.s32.totalorder %v1725_v5, 3  ;;  %vm107_vm9 = vcmp.eq.s32.totalorder %v1725_v5, 4  ;;  %vm113_vm11 = vcmp.eq.s32.totalorder %v1725_v5, 5  ;;  %vm119_vm13 = vcmp.eq.s32.totalorder %v1725_v5, 6 }
  0x11   :  { %vm132_vm0 = vcmp.eq.s32.totalorder %v1728_v6, 8  ;;  %v134_v7 = vstv %s1348_s2  ;;  %s1351_s12 = sld [smem:[#allocation2 + $0x83]]  ;;  %vm138_vm2 = vcmp.eq.s32.totalorder %v1728_v6, 9  ;;  %vm144_vm4 = vcmp.eq.s32.totalorder %v1728_v6, 10  ;;  %v1581_v58 = vld [vmem:[%s2153_s3 + $0xa] ss:$0 sm:$0xff] }
  0x12   :  { %v86_v8 = vstv %s85_s8  ;;  %s1732_s13 = sld [smem:[#allocation2 + $0x3]]  ;;  %v136_v9 = vsel %vm132_vm0, %v134_v7, 0  ;;  %vm150_vm6 = vcmp.eq.s32.totalorder %v1728_v6, 11  ;;  %vm156_vm8 = vcmp.eq.s32.totalorder %v1728_v6, 12  ;;  %289 = vmatpush.bf16.msra.mxu0 %v1523_v24  ;;  %v249_v24 = vld [vmem:[%s2155_s5] sm:$0xff] }
  0x13   :  { %v140_v10 = vstv %s1349_s9  ;;  %s1735_s14 = sld [smem:[#allocation2 + $0x84]]  ;;  %v87_v11 = vsel %vm83_vm1, %v86_v8, 0  ;;  %vm162_vm10 = vcmp.eq.s32.totalorder %v1728_v6, 13  ;;  %vm168_vm12 = vcmp.eq.s32.totalorder %v1728_v6, 14 }
  0x14   :  { %v92_v12 = vstv %s1341_s0  ;;  %s1740_s15 = sld [smem:[#allocation2 + $0x4]]  ;;  %v142_v13 = vsel %vm138_vm2, %v140_v10, %v136_v9  ;;  %vm174_vm14 = vcmp.eq.s32.totalorder %v1728_v6, 15  ;;  %vm125_vm15 = vcmp.eq.s32.totalorder %v1725_v5, 7 }
  0x15   :  { %1557 = vset.pattern.permute.xlu1 %v1670_v3  ;;  %1555 = vset.pattern.permute.xlu0 %v1670_v3  ;;  %v146_v14 = vstv %s1350_s10  ;;  %s1743_s16 = sld [smem:[#allocation2 + $0x85]]  ;;  %v93_v15 = vsel %vm89_vm3, %v92_v12, %v87_v11  ;;  %v1583_v3 = vld [vmem:[%s2153_s3 + $0xb] ss:$0 sm:$0xff] }
  0x16   :  { %75 = vperm.xlu1 %1557, %v1340_v0   ;;  %60 = vperm.xlu0 %1555, %v51_v1   ;;  %v98_v16 = vstv %s1342_s11  ;;  %s1748_s17 = sld [smem:[#allocation2 + $0x5]]  ;;  %v148_v17 = vsel %vm144_vm4, %v146_v14, %v142_v13 }
  0x17   :  { %v152_v18 = vstv %s1351_s12  ;;  %s1354_s18 = sld [smem:[#allocation2 + $0x86]]  ;;  %v99_v19 = vsel %vm95_vm5, %v98_v16, %v93_v15 }
  0x18   :  { %v104_v20 = vstv %s1732_s13  ;;  %s1346_s21 = sld [smem:[#allocation2 + $0x6]]  ;;  %v154_v22 = vsel %vm150_vm6, %v152_v18, %v148_v17  ;;  %v227_v17 = vld [vmem:[%s2153_s3 + $0x10] sm:$0xff]  ;;  %v228_v18 = vld [vmem:[%s2153_s3 + $0x18] sm:$0xff] }
  0x19   :  { %v158_v23 = vstv %s1735_s14  ;;  %s1355_s24 = sld [smem:[#allocation2 + $0x87]]  ;;  %v105_v25 = vsel %vm101_vm7, %v104_v20, %v99_v19 }
  0x1a   :  { %v110_v26 = vstv %s1740_s15  ;;  %s1347_s25 = sld [smem:[#allocation2 + $0x7]]  ;;  %v160_v27 = vsel %vm156_vm8, %v158_v23, %v154_v22 }
  0x1b   :  { %v164_v28 = vstv %s1743_s16  ;;  %v111_v29 = vsel %vm107_vm9, %v110_v26, %v105_v25 }
  0x1c   :  { %v116_v30 = vstv %s1748_s17  ;;  %v166_v31 = vsel %vm162_vm10, %v164_v28, %v160_v27  ;;  %vm278_vm10 = vcmask 261120   ;;  %s1672_s17 = smov 80   ;;  %v250_v27 = vld [vmem:[%s2155_s5 + $0x8] sm:$0xff] }
  0x1d   :  { %v170_v32 = vstv %s1354_s18  ;;  %v117_v33 = vsel %vm113_vm11, %v116_v30, %v111_v29  ;;  %vm302_vm11 = vcmask 130048  }
  0x1e   :  { %v122_v34 = vstv %s1346_s21  ;;  %v172_v35 = vsel %vm168_vm12, %v170_v32, %v166_v31  ;;  %s1674_s21 = smov 48   ;;  %v1531_v31 = vld [vmem:[%s2154_s4 + $0x10] sm:$0xff] }
  0x1f   :  { %v176_v36 = vstv %s1355_s24  ;;  %v123_v37 = vsel %vm119_vm13, %v122_v34, %v117_v33  ;;  %404 = vmatpush.bf16.msra.mxu3 %v1531_v31 }
  0x20   :  { %v128_v38 = vstv %s1347_s25  ;;  %v178_v39 = vsel %vm174_vm14, %v176_v36, %v172_v35 }
  0x21   :  { %v129_v42 = vsel %vm125_vm15, %v128_v38, %v123_v37  ;;  %vm180_vm0 = vcmp.eq.s32.totalorder %v178_v39, 0  ;;  %vm192_vm4 = vcmp.eq.s32.totalorder %v178_v39, 1  ;;  %vm204_vm6 = vcmp.eq.s32.totalorder %v178_v39, 2 }
  0x22   :  { %vm179_vm2 = vcmp.eq.s32.totalorder %v129_v42, 0  ;;  %v1357_v45 = vsel %vm180_vm0, 1.0, %v1671_v44  ;;  %vm191_vm5 = vcmp.eq.s32.totalorder %v129_v42, 1  ;;  %v1359_v50 = vsel %vm192_vm4, 1.0, %v1671_v44 }
  0x23   :  { %v1356_v48 = vsel %vm179_vm2, 1.0, %v1671_v44  ;;  %v188_v49 = vmul.f32 %v1579_v43, %v1357_v45  ;;  %vm203_vm7 = vcmp.eq.s32.totalorder %v129_v42, 2  ;;  %v1358_v54 = vsel %vm191_vm5, 1.0, %v1671_v44 }
  0x24   :  { %v187_v53 = vmul.f32 %v1579_v43, %v1356_v48  ;;  %vm215_vm8 = vcmp.eq.s32.totalorder %v129_v42, 3  ;;  %vm216_vm9 = vcmp.eq.s32.totalorder %v178_v39, 3  ;;  %v1361_v61 = vsel %vm204_vm6, 1.0, %v1671_v44  ;;  %v1836_v42 = vld [vmem:[%s2153_s3 + $0x20] sm:$0xff]  ;;  %v1842_v48 = vld [vmem:[%s2153_s3 + $0x28] sm:$0xff] }
  0x25   :  { %v1360_v62 = vsel %vm203_vm7, 1.0, %v1671_v44  ;;  %v200_v63 = vmul.f32 %v1580_v51, %v1359_v50  ;;  %v199_v1 = vmul.f32 %v1580_v51, %v1358_v54  ;;  %v1362_v4 = vsel %vm215_vm8, 1.0, %v1671_v44 }
  0x26   :  { %v1363_v6 = vsel %vm216_vm9, 1.0, %v1671_v44  ;;  %v212_v7 = vmul.f32 %v1581_v58, %v1361_v61  ;;  %v211_v9 = vmul.f32 %v1581_v58, %v1360_v62  ;;  %v223_v13 = vmul.f32 %v1583_v3, %v1362_v4 }
  0x27   :  { %v224_v14 = vmul.f32 %v1583_v3, %v1363_v6  ;;  %vm653_vm5 = vcmask 523264  }
  0x7f   :  { %v71_v40 = vpop.permute.xlu1 %70  ;;  %v55_v41 = vpop.permute.xlu0 %54 }
  0x80   :  { %v73_v56 = vmul.f32 %v1578_v46, %v71_v40  ;;  %v58_v57 = vmul.f32 %v1578_v46, %v55_v41 }
  0x88   :  { %v76_v52 = vpop.permute.xlu1 %75  ;;  %v61_v55 = vpop.permute.xlu0 %60 }
  0x89   :  { %v78_v59 = vmul.f32 %v1582_v47, %v76_v52  ;;  %v64_v60 = vmul.f32 %v1582_v47, %v61_v55 }
  0x8b   :  { %v79_v0 = vadd.f32 %v78_v59, %v73_v56  ;;  %v65_v2 = vadd.f32 %v64_v60, %v58_v57 }
  0x8d   :  { %v190_v8 = vadd.f32 %v188_v49, %v79_v0  ;;  %v189_v10 = vadd.f32 %v187_v53, %v65_v2 }
  0x8f   :  { %v202_v11 = vadd.f32 %v200_v63, %v190_v8  ;;  %v201_v12 = vadd.f32 %v199_v1, %v189_v10 }
  0x91   :  { %v214_v15 = vadd.f32 %v212_v7, %v202_v11  ;;  %v213_v16 = vadd.f32 %v211_v9, %v201_v12  ;;  %v1532_v11 = vld [vmem:[%s2154_s4 + $0x18] sm:$0xff] }
  0x92   :  { %524 = vmatpush.bf16.msrb.mxu0 %v1532_v11 }
  0x93   :  { %v225_v19 = vadd.f32 %v223_v13, %v213_v16  ;;  %v226_v20 = vadd.f32 %v224_v14, %v214_v15 }
  0x95   :  { %v1803_v21 = vadd.f32 %v227_v17, %v225_v19  ;;  %v1805_v22 = vadd.f32 %v228_v18, %v226_v20 }
  0x97   :  { %v265_v23 = vpack.c.bf16 %v1805_v22, %v1803_v21 }
  0x99   :  { %1372 = vmatmul.msk.bf16.vlgmr.msra.gmra.mxu0 %vm278_vm10, %v265_v23 }
 0x116   :  { %v291_v25 = vpop.f32.mrf.mxu0 }
 0x117   :  { %v292_v26 = vadd.f32 %v291_v25, %v249_v24  ;;  %v253_v24 = vld [vmem:[%s2155_s5 + $0x20] sm:$0xff] }
 0x119   :  { %419 = vrot.lane.b32.xlu0 %v292_v26, %s1672_s17 }
 0x11e   :  { %v293_v28 = vpop.f32.mrf.mxu0 }
 0x11f   :  { %v294_v29 = vadd.f32 %v293_v28, %v250_v27 }
 0x121   :  { %300 = vrot.lane.b32.xlu2 %v294_v29, %s1673_s20  ;;  %v1563_v30 = vpack.i.bf16 %v292_v26, %v294_v29 }
 0x123   :  { %1564 = vrot.lane.b32.xlu0 %v1563_v30, %s1674_s21  ;;  %1559 = vrot.lane.b32.xlu1 %v1563_v30, %s1675_s22 }
 0x129   :  { %298 = vrot.lane.b32.xlu2 %v292_v26, %s1673_s20 }
 0x12b   :  { %415 = vrot.lane.b32.xlu1 %v292_v26, %s1676_s23 }
 0x131   :  { %421 = vrot.lane.b32.xlu2 %v294_v29, %s1672_s17 }
 0x139   :  { %417 = vrot.lane.b32.xlu2 %v294_v29, %s1676_s23 }
 0x17b   :  { %v301_v32 = vpop.permute.xlu2 %300 }
 0x17c   :  { %1373 = vmatpush.xpose.msk.msra.mxu1 %vm302_vm11, %v301_v32 }
 0x183   :  { %v299_v33 = vpop.permute.xlu2 %298 }
 0x184   :  { %1374 = vmatpush.xpose.msk.msra.mxu1 %vm302_vm11, %v299_v33 }
 0x187   :  { %1375 = vmatmul.msk.f32.vlgmr.msra.gmra.mxu1 %vm302_vm11, %v292_v26 }
 0x18b   :  { %v420_v34 = vpop.permute.xlu0 %419  ;;  %v422_v41 = vpop.permute.xlu2 %421 }
 0x18f   :  { %1376 = vmatmul.msk.f32.gmra.mxu1 %vm302_vm11, %v294_v29 }
 0x193   :  { %v418_v58 = vpop.permute.xlu2 %417 }
 0x195   :  { %v1565_v35 = vpop.permute.xlu0 %1564  ;;  %v1560_v36 = vpop.permute.xlu1 %1559 }
 0x196   :  { %v1561_v37 = vunpack.i.l.bf16 %v1560_v36  ;;  %v1566_v38 = vunpack.i.l.bf16 %v1565_v35  ;;  %v1562_v39 = vunpack.i.h.bf16 %v1560_v36  ;;  %v1567_v40 = vunpack.i.h.bf16 %v1565_v35 }
 0x198   :  { %376 = vmatpush.msra.mxu2 %v1561_v37  ;;  %496 = vmatpush.msrb.mxu3 %v1566_v38 }
 0x19a   :  { %377 = vmatpush.msra.mxu2 %v1562_v39  ;;  %497 = vmatpush.msrb.mxu3 %v1567_v40 }
 0x19c   :  { %1384 = vmatpush.xpose.msk.msrb.mxu2 %vm302_vm11, %v422_v41 }
 0x19d   :  { %v416_v57 = vpop.permute.xlu1 %415 }
 0x1a0   :  { %1385 = vmatpush.xpose.msk.msrb.mxu2 %vm302_vm11, %v420_v34  ;;  %v254_v34 = vld [vmem:[%s2155_s5 + $0x28] sm:$0xff] }
 0x204   :  { %v328_v43 = vpop.f32.mrf.mxu1 }
 0x205   :  { %v334_v45 = vmul.f32 0.25, %v328_v43 }
 0x207   :  { %v336_v46 = vadd.f32 %v334_v45, %v1836_v42 }
 0x209   :  { %v338_v47 = vmul.f32 1.442695, %v336_v46 }
 0x20b   :  { %1589 = vpow2.f32 %v338_v47 }
 0x20c   :  { %v331_v49 = vpop.f32.mrf.mxu1 }
 0x20d   :  { %v335_v50 = vmul.f32 0.25, %v331_v49  ;;  %v1677_v49 = vmov 32.0  }
 0x20f   :  { %v337_v51 = vadd.f32 %v335_v50, %v1842_v48 }
 0x211   :  { %v1590_v52 = vpop.eup %1589  ;;  %v340_v53 = vmul.f32 1.442695, %v337_v51 }
 0x212   :  { %1377 = vmatmul.msk.f32.vlgmr.msra.gmra.mxu2 %vm302_vm11, %v1590_v52  ;;  %v342_v54 = vsel %vm302_vm11, %v1590_v52, 0.0 }
 0x213   :  { %1591 = vpow2.f32 %v340_v53  ;;  %343 = vadd.xlane.f32.xlu1 %v342_v54 }
 0x219   :  { %v1592_v55 = vpop.eup %1591 }
 0x21a   :  { %1378 = vmatmul.msk.f32.gmra.mxu2 %vm302_vm11, %v1592_v55  ;;  %v345_v56 = vsel %vm302_vm11, %v1592_v55, 0.0 }
 0x21b   :  { %346 = vadd.xlane.f32.xlu2 %v345_v56 }
 0x222   :  { %1386 = vmatmul.msk.f32.vlgmr.msrb.gmra.mxu2 %vm302_vm11, %v416_v57 }
 0x22a   :  { %1387 = vmatmul.msk.f32.gmra.mxu2 %vm302_vm11, %v418_v58  ;;  %v1526_v58 = vld [vmem:[%s2154_s4 + $0x28] sm:$0xff] }
 0x22b   :  { %618 = vmatpush.bf16.msrb.mxu1 %v1526_v58  ;;  %v256_v58 = vld [vmem:[%s2155_s5 + $0x38] sm:$0xff] }
 0x286   :  { %v344_v17 = vpop.xlane.xlu1 %343 }
 0x28e   :  { %v347_v18 = vpop.xlane.xlu2 %346 }
 0x295   :  { %v379_v59 = vpop.f32.mrf.mxu2 }
 0x29d   :  { %v382_v60 = vpop.f32.mrf.mxu2 }
 0x29e   :  { %v387_v61 = vpack.c.bf16 %v382_v60, %v379_v59 }
 0x2a0   :  { %1383 = vmatmul.msk.bf16.vlgmr.msra.gmra.mxu3 %vm302_vm11, %v387_v61  ;;  %v1525_v61 = vld [vmem:[%s2154_s4 + $0x20] sm:$0xff] }
 0x2a1   :  { %619 = vmatpush.bf16.msrb.mxu1 %v1525_v61 }
 0x2a5   :  { %v448_v62 = vpop.f32.mrf.mxu2 }
 0x2a6   :  { %v454_v63 = vmul.f32 0.25, %v448_v62 }
 0x2a8   :  { %v456_v0 = vadd.f32 %v454_v63, %v1836_v42 }
 0x2aa   :  { %v458_v1 = vmul.f32 1.442695, %v456_v0 }
 0x2ac   :  { %1593 = vpow2.f32 %v458_v1 }
 0x2ad   :  { %v451_v2 = vpop.f32.mrf.mxu2 }
 0x2ae   :  { %v455_v3 = vmul.f32 0.25, %v451_v2 }
 0x2b0   :  { %v457_v4 = vadd.f32 %v455_v3, %v1842_v48 }
 0x2b2   :  { %v1594_v6 = vpop.eup %1593  ;;  %v460_v7 = vmul.f32 1.442695, %v457_v4 }
 0x2b3   :  { %1388 = vmatmul.msk.f32.vlgmr.msrb.gmra.mxu3 %vm302_vm11, %v1594_v6  ;;  %v462_v8 = vsel %vm302_vm11, %v1594_v6, 0.0 }
 0x2b4   :  { %1595 = vpow2.f32 %v460_v7  ;;  %463 = vadd.xlane.f32.xlu0 %v462_v8 }
 0x2b5   :  { %1597 = vrcp.f32 %v344_v17 }
 0x2ba   :  { %v1596_v9 = vpop.eup %1595 }
 0x2bb   :  { %1389 = vmatmul.msk.f32.gmra.mxu3 %vm302_vm11, %v1596_v9  ;;  %v465_v10 = vsel %vm302_vm11, %v1596_v9, 0.0  ;;  %v1598_v20 = vpop.eup %1597 }
 0x2bc   :  { %466 = vadd.xlane.f32.xlu2 %v465_v10 }
 0x323   :  { %v406_v12 = vpop.f32.mrf.mxu3 }
 0x324   :  { %v411_v23 = vmul.f32 %v1598_v20, %v406_v12 }
 0x326   :  { %v413_v28 = vadd.f32 %v411_v23, %v253_v24 }
 0x327   :  { %v464_v19 = vpop.xlane.xlu0 %463 }
 0x328   :  { %1599 = vrcp.f32 %v464_v19 }
 0x329   :  { %1601 = vrcp.f32 %v347_v18 }
 0x32b   :  { %v408_v13 = vpop.f32.mrf.mxu3 }
 0x32e   :  { %v1600_v26 = vpop.eup %1599 }
 0x32f   :  { %v467_v25 = vpop.xlane.xlu2 %466  ;;  %v1602_v31 = vpop.eup %1601 }
 0x330   :  { %1603 = vrcp.f32 %v467_v25  ;;  %v412_v32 = vmul.f32 %v1602_v31, %v408_v13  ;;  %v257_v25 = vld [vmem:[%s2155_s5 + $0x40] sm:$0xff]  ;;  %v259_v31 = vld [vmem:[%s2155_s5 + $0x50] sm:$0xff] }
 0x331   :  { %1605 = vrcp.f32 %v1677_v49 }
 0x332   :  { %v414_v39 = vadd.f32 %v412_v32, %v254_v34  ;;  %v260_v32 = vld [vmem:[%s2155_s5 + $0x58] sm:$0xff] }
 0x336   :  { %v499_v14 = vpop.f32.mrf.mxu3  ;;  %v1604_v37 = vpop.eup %1603 }
 0x337   :  { %v1606_v50 = vpop.eup %1605 }
 0x338   :  { %v544_v51 = vmul.f32 32.0, %v1606_v50  ;;  %vm548_vm12 = vweird.f32 %v1606_v50 }
 0x33a   :  { %v545_v52 = vsub.f32 1.0, %v544_v51 }
 0x33c   :  { %v546_v53 = vmul.f32 %v1606_v50, %v545_v52  ;;  %v255_v52 = vld [vmem:[%s2155_s5 + $0x30] sm:$0xff] }
 0x33e   :  { %v502_v15 = vpop.f32.mrf.mxu3  ;;  %v547_v54 = vadd.f32 %v1606_v50, %v546_v53 }
 0x33f   :  { %v507_v16 = vpack.c.bf16 %v502_v15, %v499_v14 }
 0x340   :  { %v1879_v55 = vsel %vm548_vm12, %v1606_v50, %v547_v54 }
 0x341   :  { %1394 = vmatmul.msk.bf16.vlgmr.msrb.gmra.mxu0 %vm302_vm11, %v507_v16 }
 0x3be   :  { %v526_v27 = vpop.f32.mrf.mxu0 }
 0x3bf   :  { %v531_v29 = vmul.f32 %v1600_v26, %v526_v27 }
 0x3c1   :  { %v533_v30 = vadd.f32 %v531_v29, %v413_v28  ;;  %v258_v28 = vld [vmem:[%s2155_s5 + $0x48] sm:$0xff] }
 0x3c3   :  { %v1866_v33 = vadd.f32 %v533_v30, %v1803_v21 }
 0x3c5   :  { %v537_v35 = vsel %vm278_vm10, %v1866_v33, 0.0  ;;  %v552_v36 = vmul.f32 %v1866_v33, %v1866_v33 }
 0x3c6   :  { %538 = vadd.xlane.f32.xlu1 %v537_v35  ;;  %v528_v38 = vpop.f32.mrf.mxu0 }
 0x3c7   :  { %v532_v40 = vmul.f32 %v1604_v37, %v528_v38  ;;  %v554_v41 = vsel %vm278_vm10, %v552_v36, 0.0  ;;  %v1530_v37 = vld [vmem:[%s2154_s4 + $0x48] sm:$0xff]  ;;  %v1529_v38 = vld [vmem:[%s2154_s4 + $0x40] sm:$0xff] }
 0x3c8   :  { %555 = vadd.xlane.f32.xlu0 %v554_v41  ;;  %661 = vmatpush.bf16.msra.mxu2 %v1530_v37 }
 0x3c9   :  { %v534_v21 = vadd.f32 %v532_v40, %v414_v39  ;;  %v1528_v39 = vld [vmem:[%s2154_s4 + $0x38] sm:$0xff]  ;;  %v1527_v40 = vld [vmem:[%s2154_s4 + $0x30] sm:$0xff] }
 0x3cb   :  { %v536_v43 = vadd.f32 %v534_v21, %v1805_v22  ;;  %v251_v21 = vld [vmem:[%s2155_s5 + $0x10] sm:$0xff] }
 0x3cc   :  { %662 = vmatpush.bf16.msra.mxu2 %v1529_v38  ;;  %v262_v38 = vld [vmem:[%s2155_s5 + $0x68] sm:$0xff] }
 0x3cd   :  { %v540_v45 = vsel %vm278_vm10, %v536_v43, 0.0  ;;  %v553_v46 = vmul.f32 %v536_v43, %v536_v43 }
 0x3ce   :  { %541 = vadd.xlane.f32.xlu2 %v540_v45 }
 0x3cf   :  { %v557_v47 = vsel %vm278_vm10, %v553_v46, 0.0 }
 0x3d0   :  { %558 = vadd.xlane.f32.xlu1 %v557_v47  ;;  %663 = vmatpush.bf16.msra.mxu2 %v1528_v39 }
 0x3d4   :  { %664 = vmatpush.bf16.msra.mxu2 %v1527_v40 }
 0x439   :  { %v539_v56 = vpop.xlane.xlu1 %538 }
 0x43a   :  { %v550_v22 = vmul.f32 %v1879_v55, %v539_v56 }
 0x43b   :  { %v556_v57 = vpop.xlane.xlu0 %555 }
 0x43c   :  { %v562_v59 = vmul.f32 %v550_v22, %v550_v22  ;;  %v560_v60 = vmul.f32 %v556_v57, %v1879_v55  ;;  %v588_v19 = vsub.f32 %v1866_v33, %v550_v22 }
 0x43e   :  { %v564_v62 = vsub.f32 %v560_v60, %v562_v59 }
 0x440   :  { %v566_v63 = vadd.f32 1e-05, %v564_v62 }
 0x441   :  { %v542_v0 = vpop.xlane.xlu2 %541 }
 0x442   :  { %1607 = vrsqrt.f32 %v566_v63  ;;  %v551_v1 = vmul.f32 %v1879_v55, %v542_v0  ;;  %vm574_vm14 = vweird.f32 %v566_v63 }
 0x443   :  { %v559_v2 = vpop.xlane.xlu1 %558 }
 0x444   :  { %v563_v3 = vmul.f32 %v551_v1, %v551_v1  ;;  %v561_v4 = vmul.f32 %v559_v2, %v1879_v55  ;;  %v589_v26 = vsub.f32 %v536_v43, %v551_v1  ;;  %v252_v43 = vld [vmem:[%s2155_s5 + $0x18] sm:$0xff] }
 0x446   :  { %v565_v6 = vsub.f32 %v561_v4, %v563_v3 }
 0x448   :  { %v1608_v7 = vpop.eup %1607  ;;  %v567_v8 = vadd.f32 1e-05, %v565_v6  ;;  %v1534_v6 = vld [vmem:[%s2154_s4 + $0x58] sm:$0xff] }
 0x449   :  { %v569_v9 = vmul.f32 %v1608_v7, %v566_v63  ;;  %vm575_vm13 = vweird.f32 %v1608_v7  ;;  %781 = vmatpush.bf16.msra.mxu3 %v1534_v6 }
 0x44a   :  { %1609 = vrsqrt.f32 %v567_v8  ;;  %vm576_vm15 = vmor %vm574_vm14, %vm575_vm13  ;;  %vm584_vm2 = vweird.f32 %v567_v8 }
 0x44b   :  { %v570_v10 = vmul.f32 %v1608_v7, %v569_v9 }
 0x44d   :  { %v571_v11 = vmul.f32 0.5, %v570_v10  ;;  %v1533_v10 = vld [vmem:[%s2154_s4 + $0x50] sm:$0xff] }
 0x44e   :  { %782 = vmatpush.bf16.msra.mxu3 %v1533_v10 }
 0x44f   :  { %v572_v12 = vsub.f32 1.5, %v571_v11 }
 0x450   :  { %v1610_v13 = vpop.eup %1609 }
 0x451   :  { %v573_v14 = vmul.f32 %v1608_v7, %v572_v12  ;;  %v579_v15 = vmul.f32 %v1610_v13, %v567_v8  ;;  %vm585_vm0 = vweird.f32 %v1610_v13 }
 0x452   :  { %vm586_vm4 = vmor %vm584_vm2, %vm585_vm0 }
 0x453   :  { %v580_v16 = vmul.f32 %v1610_v13, %v579_v15  ;;  %v577_v17 = vsel %vm576_vm15, %v1608_v7, %v573_v14 }
 0x454   :  { %v590_v23 = vmul.f32 %v588_v19, %v577_v17 }
 0x455   :  { %v581_v18 = vmul.f32 0.5, %v580_v16 }
 0x456   :  { %v592_v30 = vmul.f32 %v590_v23, %v257_v25 }
 0x457   :  { %v582_v20 = vsub.f32 1.5, %v581_v18 }
 0x458   :  { %v594_v34 = vadd.f32 %v592_v30, %v259_v31 }
 0x459   :  { %v583_v24 = vmul.f32 %v1610_v13, %v582_v20 }
 0x45b   :  { %v587_v27 = vsel %vm586_vm4, %v1610_v13, %v583_v24 }
 0x45c   :  { %v591_v29 = vmul.f32 %v589_v26, %v587_v27 }
 0x45e   :  { %v593_v33 = vmul.f32 %v591_v29, %v258_v28 }
 0x460   :  { %v595_v35 = vadd.f32 %v593_v33, %v260_v32 }
 0x462   :  { %v596_v36 = vpack.c.bf16 %v595_v35, %v594_v34 }
 0x464   :  { %1403 = vmatmul.msk.bf16.vlgmr.msrb.gmra.mxu1 %vm278_vm10, %v596_v36 }
 0x4e1   :  { %v621_v41 = vpop.f32.mrf.mxu1 }
 0x4e2   :  { %v622_v45 = vadd.f32 %v621_v41, %v251_v21  ;;  %v263_v21 = vld [vmem:[%s2155_s5 + $0x70] sm:$0xff] }
 0x4e4   :  { %v626_v49 = vmax.f32 %v622_v45, 0.0 }
 0x4e9   :  { %v623_v46 = vpop.f32.mrf.mxu1 }
 0x4ea   :  { %v624_v47 = vadd.f32 %v623_v46, %v252_v43  ;;  %v264_v43 = vld [vmem:[%s2155_s5 + $0x78] sm:$0xff] }
 0x4ec   :  { %v627_v50 = vmax.f32 %v624_v47, 0.0 }
 0x4ee   :  { %v628_v51 = vpack.c.bf16 %v627_v50, %v626_v49  ;;  %v1437_v50 = vld [vmem:[%s2155_s5 + $0x80] sm:$0xff] }
 0x4f0   :  { %1420 = vmatmul.msk.bf16.vlgmr.msra.gmra.mxu2 %vm653_vm5, %v628_v51 }
 0x573   :  { %v666_v53 = vpop.f32.mrf.mxu2 }
 0x574   :  { %v667_v54 = vadd.f32 %v666_v53, %v255_v52  ;;  %v1438_v53 = vld [vmem:[%s2155_s5 + $0x88] sm:$0xff] }
 0x576   :  { %v671_v56 = vadd.f32 %v667_v54, %v594_v34 }
 0x578   :  { %v673_v22 = vsel %vm278_vm10, %v671_v56, 0.0  ;;  %v681_v57 = vmul.f32 %v671_v56, %v671_v56 }
 0x579   :  { %674 = vadd.xlane.f32.xlu2 %v673_v22 }
 0x57a   :  { %v683_v59 = vsel %vm278_vm10, %v681_v57, 0.0 }
 0x57b   :  { %v668_v60 = vpop.f32.mrf.mxu2  ;;  %684 = vadd.xlane.f32.xlu1 %v683_v59 }
 0x57c   :  { %v669_v61 = vadd.f32 %v668_v60, %v256_v58 }
 0x57e   :  { %v672_v62 = vadd.f32 %v669_v61, %v595_v35  ;;  %v261_v35 = vld [vmem:[%s2155_s5 + $0x60] sm:$0xff] }
 0x580   :  { %v676_v63 = vsel %vm278_vm10, %v672_v62, 0.0  ;;  %v682_v0 = vmul.f32 %v672_v62, %v672_v62 }
 0x581   :  { %677 = vadd.xlane.f32.xlu0 %v676_v63 }
 0x582   :  { %v686_v1 = vsel %vm278_vm10, %v682_v0, 0.0 }
 0x583   :  { %687 = vadd.xlane.f32.xlu2 %v686_v1 }
 0x5ec   :  { %v675_v2 = vpop.xlane.xlu2 %674 }
 0x5ed   :  { %v679_v3 = vmul.f32 %v675_v2, %v1879_v55 }
 0x5ee   :  { %v685_v4 = vpop.xlane.xlu1 %684 }
 0x5ef   :  { %v691_v7 = vmul.f32 %v679_v3, %v679_v3  ;;  %v689_v8 = vmul.f32 %v685_v4, %v1879_v55  ;;  %v717_v32 = vsub.f32 %v671_v56, %v679_v3 }
 0x5f1   :  { %v693_v9 = vsub.f32 %v689_v8, %v691_v7 }
 0x5f3   :  { %v695_v11 = vadd.f32 1e-05, %v693_v9 }
 0x5f4   :  { %v678_v12 = vpop.xlane.xlu0 %677 }
 0x5f5   :  { %1611 = vrsqrt.f32 %v695_v11  ;;  %v680_v13 = vmul.f32 %v678_v12, %v1879_v55  ;;  %vm703_vm7 = vweird.f32 %v695_v11 }
 0x5f6   :  { %v688_v14 = vpop.xlane.xlu2 %687 }
 0x5f7   :  { %v692_v15 = vmul.f32 %v680_v13, %v680_v13  ;;  %v690_v16 = vmul.f32 %v688_v14, %v1879_v55  ;;  %v718_v37 = vsub.f32 %v672_v62, %v680_v13 }
 0x5f9   :  { %v694_v17 = vsub.f32 %v690_v16, %v692_v15 }
 0x5fb   :  { %v1612_v18 = vpop.eup %1611  ;;  %v696_v19 = vadd.f32 1e-05, %v694_v17 }
 0x5fc   :  { %v698_v20 = vmul.f32 %v1612_v18, %v695_v11  ;;  %vm704_vm6 = vweird.f32 %v1612_v18 }
 0x5fd   :  { %1613 = vrsqrt.f32 %v696_v19  ;;  %vm705_vm8 = vmor %vm703_vm7, %vm704_vm6  ;;  %vm713_vm12 = vweird.f32 %v696_v19 }
 0x5fe   :  { %v699_v23 = vmul.f32 %v1612_v18, %v698_v20 }
 0x600   :  { %v700_v24 = vmul.f32 0.5, %v699_v23 }
 0x602   :  { %v701_v25 = vsub.f32 1.5, %v700_v24 }
 0x603   :  { %v1614_v26 = vpop.eup %1613 }
 0x604   :  { %v702_v27 = vmul.f32 %v1612_v18, %v701_v25  ;;  %v708_v28 = vmul.f32 %v1614_v26, %v696_v19  ;;  %vm714_vm9 = vweird.f32 %v1614_v26 }
 0x605   :  { %vm715_vm13 = vmor %vm713_vm12, %vm714_vm9 }
 0x606   :  { %v709_v29 = vmul.f32 %v1614_v26, %v708_v28  ;;  %v706_v30 = vsel %vm705_vm8, %v1612_v18, %v702_v27 }
 0x607   :  { %v719_v34 = vmul.f32 %v717_v32, %v706_v30 }
 0x608   :  { %v710_v31 = vmul.f32 0.5, %v709_v29 }
 0x609   :  { %v721_v40 = vmul.f32 %v719_v34, %v261_v35 }
 0x60a   :  { %v711_v33 = vsub.f32 1.5, %v710_v31  ;;  %v1542_v31 = vld [vmem:[%s2154_s4 + $0x68] sm:$0xff] }
 0x60b   :  { %v1956_v46 = vadd.f32 %v721_v40, %v263_v21 }
 0x60c   :  { %v712_v36 = vmul.f32 %v1614_v26, %v711_v33 }
 0x60e   :  { %v716_v39 = vsel %vm715_vm13, %v1614_v26, %v712_v36 }
 0x60f   :  { %v720_v41 = vmul.f32 %v718_v37, %v716_v39 }
 0x611   :  { %v722_v45 = vmul.f32 %v720_v41, %v262_v38 }
 0x613   :  { %v1958_v47 = vadd.f32 %v722_v45, %v264_v43  ;;  %v1441_v45 = vld [vmem:[%s2155_s5 + $0xa0] sm:$0xff] }
 0x615   :  { %v759_v49 = vpack.c.bf16 %v1958_v47, %v1956_v46 }
 0x617   :  { %1461 = vmatmul.msk.bf16.vlgmr.msra.gmra.mxu3 %vm278_vm10, %v759_v49 }
 0x69a   :  { %v784_v51 = vpop.f32.mrf.mxu3 }
 0x69b   :  { %v785_v52 = vadd.f32 %v1437_v50, %v784_v51 }
 0x69d   :  { %791 = vrot.lane.b32.xlu2 %v785_v52, %s1673_s20 }
 0x6a2   :  { %v786_v54 = vpop.f32.mrf.mxu3 }
 0x6a3   :  { %v787_v56 = vadd.f32 %v1438_v53, %v786_v54 }
 0x6a5   :  { %913 = vrot.lane.b32.xlu1 %v787_v56, %s1672_s17  ;;  %793 = vrot.lane.b32.xlu0 %v787_v56, %s1673_s20  ;;  %v1568_v22 = vpack.i.bf16 %v785_v52, %v787_v56  ;;  %s1233_s20 = sld [smem:[#allocation4]] }
 0x6a7   :  { %1569 = vrot.lane.b32.xlu2 %v1568_v22, %s1675_s22 }
 0x6ad   :  { %907 = vrot.lane.b32.xlu1 %v785_v52, %s1676_s23  ;;  %911 = vrot.lane.b32.xlu0 %v785_v52, %s1672_s17 }
 0x6b5   :  { %1574 = vrot.lane.b32.xlu1 %v1568_v22, %s1674_s21  ;;  %909 = vrot.lane.b32.xlu0 %v787_v56, %s1676_s23  ;;  %s1515_s21 = sld [smem:[#allocation4 + $0x80]] }
 0x6f7   :  { %v792_v57 = vpop.permute.xlu2 %791 }
 0x701   :  { %v1570_v58 = vpop.permute.xlu2 %1569 }
 0x702   :  { %v1571_v59 = vunpack.i.l.bf16 %v1570_v58  ;;  %v1572_v60 = vunpack.i.h.bf16 %v1570_v58 }
 0x704   :  { %868 = vmatpush.msra.mxu1 %v1571_v59  ;;  %v1442_v59 = vld [vmem:[%s2155_s5 + $0xa8] sm:$0xff] }
 0x706   :  { %869 = vmatpush.msra.mxu1 %v1572_v60 }
 0x708   :  { %1016 = vmatpush.bf16.msrb.mxu1 %v1542_v31 }
 0x717   :  { %v914_v61 = vpop.permute.xlu1 %913  ;;  %v794_v62 = vpop.permute.xlu0 %793 }
 0x718   :  { %1462 = vmatpush.xpose.msk.msra.mxu0 %vm302_vm11, %v794_v62  ;;  %1475 = vmatpush.xpose.msk.msrb.mxu3 %vm302_vm11, %v914_v61 }
 0x71c   :  { %1463 = vmatpush.xpose.msk.msra.mxu0 %vm302_vm11, %v792_v57 }
 0x71f   :  { %v908_v63 = vpop.permute.xlu1 %907  ;;  %v912_v0 = vpop.permute.xlu0 %911  ;;  %1464 = vmatmul.msk.f32.vlgmr.msra.gmra.mxu0 %vm302_vm11, %v785_v52 }
 0x720   :  { %1476 = vmatpush.xpose.msk.msrb.mxu3 %vm302_vm11, %v912_v0 }
 0x723   :  { %1477 = vmatmul.msk.f32.vlgmr.msrb.gmra.mxu3 %vm302_vm11, %v908_v63 }
 0x727   :  { %v1575_v1 = vpop.permute.xlu1 %1574  ;;  %1465 = vmatmul.msk.f32.gmra.mxu0 %vm302_vm11, %v787_v56  ;;  %v910_v4 = vpop.permute.xlu0 %909 }
 0x728   :  { %v1576_v2 = vunpack.i.l.bf16 %v1575_v1  ;;  %v1577_v3 = vunpack.i.h.bf16 %v1575_v1 }
 0x72a   :  { %988 = vmatpush.msrb.mxu0 %v1576_v2 }
 0x72b   :  { %1478 = vmatmul.msk.f32.gmra.mxu3 %vm302_vm11, %v910_v4 }
 0x72c   :  { %989 = vmatpush.msrb.mxu0 %v1577_v3 }
 0x79c   :  { %v820_v6 = vpop.f32.mrf.mxu0 }
 0x79d   :  { %v826_v7 = vmul.f32 0.25, %v820_v6 }
 0x79f   :  { %v828_v8 = vadd.f32 %v826_v7, %v1836_v42 }
 0x7a1   :  { %v830_v9 = vmul.f32 1.442695, %v828_v8 }
 0x7a3   :  { %1615 = vpow2.f32 %v830_v9 }
 0x7a4   :  { %v823_v10 = vpop.f32.mrf.mxu0 }
 0x7a5   :  { %v827_v11 = vmul.f32 0.25, %v823_v10 }
 0x7a6   :  { %v940_v12 = vpop.f32.mrf.mxu3 }
 0x7a7   :  { %v829_v13 = vadd.f32 %v827_v11, %v1842_v48  ;;  %v946_v14 = vmul.f32 0.25, %v940_v12  ;;  %v1536_v11 = vld [vmem:[%s2154_s4 + $0x78] sm:$0xff] }
 0x7a9   :  { %v1616_v15 = vpop.eup %1615  ;;  %v832_v16 = vmul.f32 1.442695, %v829_v13  ;;  %v948_v17 = vadd.f32 %v946_v14, %v1836_v42  ;;  %v1535_v14 = vld [vmem:[%s2154_s4 + $0x70] sm:$0xff] }
 0x7aa   :  { %1466 = vmatmul.msk.f32.vlgmr.msra.gmra.mxu1 %vm302_vm11, %v1616_v15  ;;  %v834_v18 = vsel %vm302_vm11, %v1616_v15, 0.0 }
 0x7ab   :  { %1617 = vpow2.f32 %v832_v16  ;;  %v950_v19 = vmul.f32 1.442695, %v948_v17  ;;  %835 = vadd.xlane.f32.xlu0 %v834_v18 }
 0x7ad   :  { %1619 = vpow2.f32 %v950_v19 }
 0x7ae   :  { %v943_v20 = vpop.f32.mrf.mxu3 }
 0x7af   :  { %v947_v23 = vmul.f32 0.25, %v943_v20 }
 0x7b1   :  { %v1618_v24 = vpop.eup %1617  ;;  %v949_v25 = vadd.f32 %v947_v23, %v1842_v48  ;;  %v1541_v48 = vld [vmem:[%s2154_s4 + $0x60] sm:$0xff] }
 0x7b2   :  { %1467 = vmatmul.msk.f32.gmra.mxu1 %vm302_vm11, %v1618_v24  ;;  %v837_v26 = vsel %vm302_vm11, %v1618_v24, 0.0  ;;  %896 = vmatpush.bf16.msrb.mxu2 %v1541_v48 }
 0x7b3   :  { %v1620_v27 = vpop.eup %1619  ;;  %v952_v28 = vmul.f32 1.442695, %v949_v25  ;;  %838 = vadd.xlane.f32.xlu2 %v837_v26 }
 0x7b4   :  { %1479 = vmatmul.msk.f32.vlgmr.msrb.gmra.mxu0 %vm302_vm11, %v1620_v27  ;;  %v954_v42 = vsel %vm302_vm11, %v1620_v27, 0.0 }
 0x7b5   :  { %1621 = vpow2.f32 %v952_v28  ;;  %955 = vadd.xlane.f32.xlu1 %v954_v42 }
 0x7b6   :  { %1103 = vmatpush.bf16.msra.mxu2 %v1536_v11 }
 0x7ba   :  { %1104 = vmatpush.bf16.msra.mxu2 %v1535_v14 }
 0x7bb   :  { %v1622_v29 = vpop.eup %1621 }
 0x7bc   :  { %1480 = vmatmul.msk.f32.gmra.mxu0 %vm302_vm11, %v1622_v29  ;;  %v957_v30 = vsel %vm302_vm11, %v1622_v29, 0.0 }
 0x7bd   :  { %958 = vadd.xlane.f32.xlu0 %v957_v30 }
 0x81e   :  { %v836_v38 = vpop.xlane.xlu0 %835 }
 0x81f   :  { %1623 = vrcp.f32 %v836_v38 }
 0x825   :  { %v1624_v41 = vpop.eup %1623 }
 0x826   :  { %v839_v40 = vpop.xlane.xlu2 %838 }
 0x827   :  { %v871_v32 = vpop.f32.mrf.mxu1 }
 0x828   :  { %v956_v39 = vpop.xlane.xlu1 %955 }
 0x829   :  { %1625 = vrcp.f32 %v956_v39 }
 0x82a   :  { %1627 = vrcp.f32 %v839_v40  ;;  %v1446_v40 = vld [vmem:[%s2155_s5 + $0xc8] sm:$0xff] }
 0x82f   :  { %v874_v33 = vpop.f32.mrf.mxu1  ;;  %v1626_v50 = vpop.eup %1625 }
 0x830   :  { %v879_v34 = vpack.c.bf16 %v874_v33, %v871_v32  ;;  %v959_v49 = vpop.xlane.xlu0 %958  ;;  %v1628_v56 = vpop.eup %1627 }
 0x831   :  { %v991_v35 = vpop.f32.mrf.mxu0  ;;  %1629 = vrcp.f32 %v959_v49  ;;  %v1448_v49 = vld [vmem:[%s2155_s5 + $0xd8] sm:$0xff] }
 0x832   :  { %1474 = vmatmul.msk.bf16.vlgmr.msrb.gmra.mxu2 %vm302_vm11, %v879_v34 }
 0x837   :  { %v1630_v62 = vpop.eup %1629 }
 0x839   :  { %v994_v36 = vpop.f32.mrf.mxu0 }
 0x83a   :  { %v999_v37 = vpack.c.bf16 %v994_v36, %v991_v35 }
 0x83c   :  { %1487 = vmatmul.msk.bf16.vlgmr.msrb.gmra.mxu1 %vm302_vm11, %v999_v37  ;;  %v1445_v37 = vld [vmem:[%s2155_s5 + $0xc0] sm:$0xff] }
 0x8b5   :  { %v898_v21 = vpop.f32.mrf.mxu2 }
 0x8b6   :  { %v903_v43 = vmul.f32 %v1624_v41, %v898_v21 }
 0x8b8   :  { %v905_v52 = vadd.f32 %v1441_v45, %v903_v43  ;;  %v1447_v45 = vld [vmem:[%s2155_s5 + $0xd0] sm:$0xff] }
 0x8b9   :  { %v1018_v51 = vpop.f32.mrf.mxu1 }
 0x8ba   :  { %v1023_v53 = vmul.f32 %v1626_v50, %v1018_v51 }
 0x8bc   :  { %v1025_v54 = vadd.f32 %v1023_v53, %v905_v52 }
 0x8bd   :  { %v900_v22 = vpop.f32.mrf.mxu2 }
 0x8be   :  { %v1027_v57 = vadd.f32 %v1025_v54, %v1956_v46  ;;  %v904_v58 = vmul.f32 %v1628_v56, %v900_v22  ;;  %v1540_v54 = vld [vmem:[%s2154_s4 + $0x98] sm:$0xff]  ;;  %v1539_v56 = vld [vmem:[%s2154_s4 + $0x90] sm:$0xff]  ;;  %v1538_v22 = vld [vmem:[%s2154_s4 + $0x88] sm:$0xff] }
 0x8bf   :  { %1145 = vmatpush.bf16.msra.mxu3 %v1540_v54 }
 0x8c0   :  { %v1029_v60 = vsel %vm278_vm10, %v1027_v57, 0.0  ;;  %v1037_v61 = vmul.f32 %v1027_v57, %v1027_v57  ;;  %v906_v0 = vadd.f32 %v1442_v59, %v904_v58  ;;  %v1439_v59 = vld [vmem:[%s2155_s5 + $0x90] sm:$0xff] }
 0x8c1   :  { %v1020_v63 = vpop.f32.mrf.mxu1  ;;  %1030 = vadd.xlane.f32.xlu2 %v1029_v60  ;;  %v1440_v60 = vld [vmem:[%s2155_s5 + $0x98] sm:$0xff] }
 0x8c2   :  { %v1024_v1 = vmul.f32 %v1630_v62, %v1020_v63  ;;  %v1039_v2 = vsel %vm278_vm10, %v1037_v61, 0.0 }
 0x8c3   :  { %1040 = vadd.xlane.f32.xlu0 %v1039_v2  ;;  %1146 = vmatpush.bf16.msra.mxu3 %v1539_v56 }
 0x8c4   :  { %v1026_v3 = vadd.f32 %v1024_v1, %v906_v0 }
 0x8c6   :  { %v1028_v4 = vadd.f32 %v1026_v3, %v1958_v47  ;;  %v1443_v3 = vld [vmem:[%s2155_s5 + $0xb0] sm:$0xff] }
 0x8c7   :  { %1147 = vmatpush.bf16.msra.mxu3 %v1538_v22 }
 0x8c8   :  { %v1032_v46 = vsel %vm278_vm10, %v1028_v4, 0.0  ;;  %v1038_v6 = vmul.f32 %v1028_v4, %v1028_v4 }
 0x8c9   :  { %1033 = vadd.xlane.f32.xlu1 %v1032_v46 }
 0x8ca   :  { %v1042_v7 = vsel %vm278_vm10, %v1038_v6, 0.0 }
 0x8cb   :  { %1043 = vadd.xlane.f32.xlu2 %v1042_v7 }
 0x934   :  { %v1031_v8 = vpop.xlane.xlu2 %1030 }
 0x935   :  { %v1035_v9 = vmul.f32 %v1031_v8, %v1879_v55  ;;  %v1444_v8 = vld [vmem:[%s2155_s5 + $0xb8] sm:$0xff] }
 0x936   :  { %v1041_v10 = vpop.xlane.xlu0 %1040 }
 0x937   :  { %v1047_v12 = vmul.f32 %v1035_v9, %v1035_v9  ;;  %v1045_v13 = vmul.f32 %v1041_v10, %v1879_v55  ;;  %v1073_v34 = vsub.f32 %v1027_v57, %v1035_v9  ;;  %v1537_v57 = vld [vmem:[%s2154_s4 + $0x80] sm:$0xff] }
 0x938   :  { %1148 = vmatpush.bf16.msra.mxu3 %v1537_v57  ;;  %v1449_v57 = vld [vmem:[%s2155_s5 + $0xe0] sm:$0xff] }
 0x939   :  { %v1049_v47 = vsub.f32 %v1045_v13, %v1047_v12 }
 0x93b   :  { %v1051_v15 = vadd.f32 1e-05, %v1049_v47 }
 0x93c   :  { %v1034_v16 = vpop.xlane.xlu1 %1033 }
 0x93d   :  { %1631 = vrsqrt.f32 %v1051_v15  ;;  %v1036_v17 = vmul.f32 %v1034_v16, %v1879_v55  ;;  %vm1059_vm15 = vweird.f32 %v1051_v15 }
 0x93e   :  { %v1044_v18 = vpop.xlane.xlu2 %1043 }
 0x93f   :  { %v1048_v19 = vmul.f32 %v1036_v17, %v1036_v17  ;;  %v1046_v20 = vmul.f32 %v1044_v18, %v1879_v55  ;;  %v1074_v39 = vsub.f32 %v1028_v4, %v1036_v17 }
 0x941   :  { %v1050_v23 = vsub.f32 %v1046_v20, %v1048_v19 }
 0x943   :  { %v1632_v24 = vpop.eup %1631  ;;  %v1052_v25 = vadd.f32 1e-05, %v1050_v23 }
 0x944   :  { %v1054_v26 = vmul.f32 %v1632_v24, %v1051_v15  ;;  %vm1060_vm14 = vweird.f32 %v1632_v24 }
 0x945   :  { %1633 = vrsqrt.f32 %v1052_v25  ;;  %vm1061_vm0 = vmor %vm1059_vm15, %vm1060_vm14  ;;  %vm1069_vm4 = vweird.f32 %v1052_v25  ;;  %vm1308_vm15 = vcmask 195584  }
 0x946   :  { %v1055_v27 = vmul.f32 %v1632_v24, %v1054_v26 }
 0x948   :  { %v1056_v28 = vmul.f32 0.5, %v1055_v27 }
 0x94a   :  { %v1057_v42 = vsub.f32 1.5, %v1056_v28  ;;  %v1277_v28 = vld [vmem:[%s2153_s3 + $0x50] sm:$0xff] }
 0x94b   :  { %v1634_v29 = vpop.eup %1633  ;;  %1298 = vmatpush.msra.mxu1 %v1277_v28 }
 0x94c   :  { %v1058_v30 = vmul.f32 %v1632_v24, %v1057_v42  ;;  %v1064_v48 = vmul.f32 %v1634_v29, %v1052_v25  ;;  %vm1070_vm2 = vweird.f32 %v1634_v29  ;;  %v1276_v42 = vld [vmem:[%s2153_s3 + $0x48] sm:$0xff] }
 0x94d   :  { %vm1071_vm6 = vmor %vm1069_vm4, %vm1070_vm2  ;;  %1299 = vmatpush.msra.mxu1 %v1276_v42 }
 0x94e   :  { %v1065_v31 = vmul.f32 %v1634_v29, %v1064_v48  ;;  %v1062_v32 = vsel %vm1061_vm0, %v1632_v24, %v1058_v30  ;;  %v1275_v48 = vld [vmem:[%s2153_s3 + $0x40] sm:$0xff]  ;;  %vm1332_vm0 = vcmask 123904  }
 0x94f   :  { %v1075_v36 = vmul.f32 %v1073_v34, %v1062_v32  ;;  %v1274_v32 = vld [vmem:[%s2153_s3 + $0x38] sm:$0xff]  ;;  %1300 = vmatpush.msra.mxu1 %v1275_v48 }
 0x950   :  { %v1066_v33 = vmul.f32 0.5, %v1065_v31  ;;  %v1282_v48 = vld [vmem:[%s2153_s3 + $0x7a] sm:$0x3] }
 0x951   :  { %v1077_v21 = vmul.f32 %v1445_v37, %v1075_v36  ;;  %1301 = vmatpush.msra.mxu1 %v1274_v32 }
 0x952   :  { %v1067_v35 = vsub.f32 1.5, %v1066_v33 }
 0x953   :  { %v1079_v51 = vadd.f32 %v1447_v45, %v1077_v21 }
 0x954   :  { %v1068_v38 = vmul.f32 %v1634_v29, %v1067_v35 }
 0x956   :  { %v1072_v41 = vsel %vm1071_vm6, %v1634_v29, %v1068_v38 }
 0x957   :  { %v1076_v43 = vmul.f32 %v1074_v39, %v1072_v41 }
 0x959   :  { %v1078_v50 = vmul.f32 %v1446_v40, %v1076_v43 }
 0x95b   :  { %v1080_v52 = vadd.f32 %v1448_v49, %v1078_v50  ;;  %v1450_v49 = vld [vmem:[%s2155_s5 + $0xe8] sm:$0xff] }
 0x95d   :  { %v1081_v53 = vpack.c.bf16 %v1080_v52, %v1079_v51 }
 0x95f   :  { %1496 = vmatmul.msk.bf16.vlgmr.msra.gmra.mxu2 %vm278_vm10, %v1081_v53 }
 0x9e2   :  { %v1106_v58 = vpop.f32.mrf.mxu2 }
 0x9e3   :  { %v1107_v61 = vadd.f32 %v1439_v59, %v1106_v58 }
 0x9e5   :  { %v1111_v0 = vmax.f32 %v1107_v61, 0.0 }
 0x9ea   :  { %v1108_v62 = vpop.f32.mrf.mxu2 }
 0x9eb   :  { %v1109_v63 = vadd.f32 %v1440_v60, %v1108_v62  ;;  %v1451_v60 = vld [vmem:[%s2155_s5 + $0xf0] sm:$0xff] }
 0x9ed   :  { %v1112_v1 = vmax.f32 %v1109_v63, 0.0  ;;  %v1209_v63 = vld [vmem:[%s2153_s3 + $0x30] sm:$0x3] }
 0x9ef   :  { %v1113_v2 = vpack.c.bf16 %v1112_v1, %v1111_v0  ;;  %v1280_v0 = vld [vmem:[%s2153_s3 + $0x70] sm:$0xff] }
 0x9f1   :  { %1513 = vmatmul.msk.bf16.vlgmr.msra.gmra.mxu3 %vm653_vm5, %v1113_v2  ;;  %v1234_v2 = vstv %s1233_s20 }
 0xa74   :  { %v1150_v4 = vpop.f32.mrf.mxu3 }
 0xa75   :  { %v1151_v46 = vadd.f32 %v1443_v3, %v1150_v4  ;;  %v1235_v3 = vsel %vm83_vm1, %v1234_v2, 0  ;;  %v1237_v4 = vstv %s1515_s21 }
 0xa77   :  { %v2062_v6 = vadd.f32 %v1151_v46, %v1079_v51  ;;  %v1279_v46 = vld [vmem:[%s2153_s3 + $0x68] sm:$0xff] }
 0xa79   :  { %v1157_v7 = vsel %vm278_vm10, %v2062_v6, 0.0  ;;  %v1165_v14 = vmul.f32 %v2062_v6, %v2062_v6 }
 0xa7a   :  { %1158 = vadd.xlane.f32.xlu0 %v1157_v7  ;;  %v1278_v7 = vld [vmem:[%s2153_s3 + $0x60] sm:$0xff] }
 0xa7b   :  { %v1167_v15 = vsel %vm278_vm10, %v1165_v14, 0.0 }
 0xa7c   :  { %v1152_v9 = vpop.f32.mrf.mxu3 }
 0xa7d   :  { %v1153_v10 = vadd.f32 %v1444_v8, %v1152_v9  ;;  %v1584_v8 = vld [vmem:[%s2153_s3 + $0x58] ss:$0 sm:$0xff]  ;;  %v1585_v9 = vld [vmem:[%s2153_s3 + $0x59] ss:$0 sm:$0xff] }
 0xa7f   :  { %v1156_v11 = vadd.f32 %v1153_v10, %v1080_v52  ;;  %v1452_v52 = vld [vmem:[%s2155_s5 + $0xf8] sm:$0xff] }
 0xa81   :  { %v1160_v12 = vsel %vm278_vm10, %v1156_v11, 0.0  ;;  %v1166_v13 = vmul.f32 %v1156_v11, %v1156_v11 }
 0xa82   :  { %1161 = vadd.xlane.f32.xlu1 %v1160_v12 }
 0xa83   :  { %v1170_v47 = vsel %vm278_vm10, %v1166_v13, 0.0  ;;  %v1586_v13 = vld [vmem:[%s2153_s3 + $0x5a] ss:$0 sm:$0xff] }
 0xa84   :  { %1171 = vadd.xlane.f32.xlu2 %v1170_v47 }
 0xa8a   :  { %1168 = vadd.xlane.f32.xlu1 %v1167_v15 }
 0xaed   :  { %v1159_v18 = vpop.xlane.xlu0 %1158 }
 0xaee   :  { %v1163_v24 = vmul.f32 %v1159_v18, %v1879_v55 }
 0xaf0   :  { %v1175_v29 = vmul.f32 %v1163_v24, %v1163_v24  ;;  %v1201_v56 = vsub.f32 %v2062_v6, %v1163_v24  ;;  %v1238_v6 = vsel %vm89_vm3, %v1237_v4, %v1235_v3 }
 0xaf1   :  { %vm1253_vm1 = vcmp.eq.s32.totalorder %v1238_v6, 2  ;;  %vm1260_vm3 = vcmp.eq.s32.totalorder %v1238_v6, 3  ;;  %vm1267_vm14 = vcmp.eq.s32.totalorder %v1238_v6, 4 }
 0xaf2   :  { %v1518_v47 = vsel %vm1253_vm1, 1.0, %v1671_v44 }
 0xaf3   :  { %v1258_v15 = vmul.f32 %v1586_v13, %v1518_v47 }
 0xaf5   :  { %v1162_v16 = vpop.xlane.xlu1 %1161 }
 0xaf6   :  { %v1164_v17 = vmul.f32 %v1162_v16, %v1879_v55  ;;  %v1587_v16 = vld [vmem:[%s2153_s3 + $0x5b] ss:$0 sm:$0xff] }
 0xaf7   :  { %v1172_v19 = vpop.xlane.xlu2 %1171 }
 0xaf8   :  { %v1176_v20 = vmul.f32 %v1164_v17, %v1164_v17  ;;  %v1174_v23 = vmul.f32 %v1172_v19, %v1879_v55  ;;  %v1202_v21 = vsub.f32 %v1156_v11, %v1164_v17  ;;  %v1519_v17 = vsel %vm1260_vm3, 1.0, %v1671_v44 }
 0xaf9   :  { %v1265_v19 = vmul.f32 %v1587_v16, %v1519_v17 }
 0xafa   :  { %v1178_v25 = vsub.f32 %v1174_v23, %v1176_v20  ;;  %v1588_v20 = vld [vmem:[%s2153_s3 + $0x5c] ss:$0 sm:$0xff]  ;;  %v1520_v23 = vsel %vm1267_vm14, 1.0, %v1671_v44 }
 0xafc   :  { %v1180_v26 = vadd.f32 1e-05, %v1178_v25  ;;  %v1272_v25 = vmul.f32 %v1588_v20, %v1520_v23 }
 0xafd   :  { %v1169_v27 = vpop.xlane.xlu1 %1168 }
 0xafe   :  { %1635 = vrsqrt.f32 %v1180_v26  ;;  %v1173_v30 = vmul.f32 %v1169_v27, %v1879_v55  ;;  %vm1197_vm7 = vweird.f32 %v1180_v26  ;;  %v1281_v27 = vld [vmem:[%s2153_s3 + $0x78] sm:$0x3] }
 0xb00   :  { %v1177_v31 = vsub.f32 %v1173_v30, %v1175_v29 }
 0xb02   :  { %v1179_v33 = vadd.f32 1e-05, %v1177_v31 }
 0xb04   :  { %v1636_v34 = vpop.eup %1635  ;;  %1637 = vrsqrt.f32 %v1179_v33  ;;  %vm1187_vm12 = vweird.f32 %v1179_v33 }
 0xb05   :  { %v1192_v35 = vmul.f32 %v1636_v34, %v1180_v26  ;;  %vm1198_vm5 = vweird.f32 %v1636_v34 }
 0xb06   :  { %vm1199_vm8 = vmor %vm1197_vm7, %vm1198_vm5 }
 0xb07   :  { %v1193_v36 = vmul.f32 %v1636_v34, %v1192_v35 }
 0xb09   :  { %v1194_v37 = vmul.f32 0.5, %v1193_v36 }
 0xb0a   :  { %v1638_v55 = vpop.eup %1637 }
 0xb0b   :  { %v1195_v38 = vsub.f32 1.5, %v1194_v37  ;;  %v1182_v39 = vmul.f32 %v1638_v55, %v1179_v33  ;;  %vm1188_vm9 = vweird.f32 %v1638_v55 }
 0xb0c   :  { %vm1189_vm13 = vmor %vm1187_vm12, %vm1188_vm9 }
 0xb0d   :  { %v1196_v40 = vmul.f32 %v1636_v34, %v1195_v38  ;;  %v1183_v41 = vmul.f32 %v1638_v55, %v1182_v39 }
 0xb0f   :  { %v1200_v43 = vsel %vm1199_vm8, %v1636_v34, %v1196_v40  ;;  %v1184_v45 = vmul.f32 0.5, %v1183_v41 }
 0xb10   :  { %v1204_v50 = vmul.f32 %v1202_v21, %v1200_v43 }
 0xb11   :  { %v1185_v51 = vsub.f32 1.5, %v1184_v45 }
 0xb12   :  { %v1206_v53 = vmul.f32 %v1450_v49, %v1204_v50 }
 0xb13   :  { %v1186_v54 = vmul.f32 %v1638_v55, %v1185_v51 }
 0xb14   :  { %v1208_v22 = vadd.f32 %v1452_v52, %v1206_v53 }
 0xb15   :  { %v1190_v58 = vsel %vm1189_vm13, %v1638_v55, %v1186_v54 }
 0xb16   :  { %1227 = vmatpush.msra.mxu0 %v1208_v22  ;;  %v1203_v59 = vmul.f32 %v1201_v56, %v1190_v58 }
 0xb18   :  { %v1205_v61 = vmul.f32 %v1449_v57, %v1203_v59 }
 0xb1a   :  { %v1207_v62 = vadd.f32 %v1451_v60, %v1205_v61 }
 0xb1c   :  { %1228 = vmatpush.msra.mxu0 %v1207_v62 }
 0xb1d   :  { %1514 = vmatmul.msk.f32.vlgmr.msra.gmra.mxu0 %vm302_vm11, %v1209_v63  ;;  %vm1246_vm11 = vcmp.eq.s32.totalorder %v1238_v6, 1 }
 0xb1e   :  { %1325 = vmatpush.msrb.mxu0 %v1280_v0  ;;  %v1517_v5 = vsel %vm1246_vm11, 1.0, %v1671_v44 }
 0xb1f   :  { %v1251_v12 = vmul.f32 %v1585_v9, %v1517_v5 }
 0xb20   :  { %1326 = vmatpush.msrb.mxu0 %v1279_v46 }
 0xb22   :  { %1327 = vmatpush.msrb.mxu0 %v1278_v7 }
 0xb9a   :  { %v1230_v1 = vpop.f32.mrf.mxu0 }
 0xb9b   :  { %1521 = vmatmul.msk.f32.vlgmr.msra.gmra.mxu1 %vm278_vm10, %v1230_v1  ;;  %vm1239_vm10 = vcmp.eq.s32.totalorder %v1238_v6, 0 }
 0xb9c   :  { %v1516_v10 = vsel %vm1239_vm10, 1.0, %v1671_v44 }
 0xb9d   :  { %v1244_v11 = vmul.f32 %v1584_v8, %v1516_v10 }
 0xb9f   :  { %v1252_v14 = vadd.f32 %v1251_v12, %v1244_v11 }
 0xba1   :  { %v1259_v18 = vadd.f32 %v1258_v15, %v1252_v14 }
 0xba3   :  { %v1266_v24 = vadd.f32 %v1265_v19, %v1259_v18 }
 0xba5   :  { %v1273_v26 = vadd.f32 %v1272_v25, %v1266_v24 }
 0xc18   :  { %v1303_v28 = vpop.f32.mrf.mxu1 }
 0xc19   :  { %v1304_v42 = vadd.f32 %v1303_v28, %v1273_v26 }
 0xc1b   :  { %v1306_v29 = vadd.f32 %v1304_v42, %v1281_v27 }
 0xc1d   :  { %v1307_v30 = vmax.f32 %v1306_v29, 0.0 }
 0xc1f   :  { %1522 = vmatmul.msk.f32.vlgmr.msrb.gmra.mxu0 %vm1308_vm15, %v1307_v30 }
 0xc9c   :  { %v1329_v31 = vpop.f32.mrf.mxu0 }
 0xc9d   :  { %v1330_v44 = vadd.f32 %v1329_v31, %v1282_v48 }
 0xc9f   :  { %1333 = vst.msk [vmem:[%s2156_s6] sm:$0x3] %vm1332_vm0, %v1330_v44 }
 0xca0   :  { %1338 = vsyncpa [#allocation3], 1 }
 0xca1   :  { %1339 = vsyncpa [#allocation5], 1 }

</bundles_post_ra>
